<compile_context>
chip_gen: v6e
topology: v6e:2x2x1
jax: 0.10.0
libtpu: 0.0.40
codegen_flags: <defaults>
</compile_context>

<pallas_src>
import functools

import jax
import jax.numpy as jnp
from jax.experimental import pallas as pl
from jax.experimental.pallas import tpu as pltpu

_NEG_INF = -1.0e30


def _round_up(x, m):
    return (x + m - 1) // m * m


def _pad2(x, rows, cols, fill=0.0):
    return jnp.pad(x, ((0, rows - x.shape[0]), (0, cols - x.shape[1])),
                   constant_values=fill)


def _vmem_budget_bytes():
    """~85% of physical VMEM for this chip generation; conservative fallback."""
    try:
        return int(pltpu.get_tpu_info().vmem_capacity_bytes * 0.85)
    except Exception:
        return 64 << 20


def _streamed_spec(shape, index_map, n_buf):
    """BlockSpec for a streamed operand, requesting deeper pipelining when useful."""
    if n_buf > 2 and hasattr(pl, "Buffered"):
        try:
            return pl.BlockSpec(shape, index_map, pipeline_mode=pl.Buffered(n_buf))
        except TypeError:           # older API without pipeline_mode: default 2 buffers
            pass
    return pl.BlockSpec(shape, index_map)


# --------------------------------------------------------------------------------------
# Kernel
# --------------------------------------------------------------------------------------
def _decoder_kernel(*refs, hidden_size_p, seq_len, seq_len_p, tile_v, n_tiles_v,
                    attn_method):
    if attn_method == "general":
        (emb_ref, h0_ref, enc_ref,
         w_ih_ref, w_hh_ref, b_ih_ref, b_hh_ref,
         w_attn_t_ref, b_attn_ref,
         w_cat_h_ref, w_cat_c_ref, b_cat_ref,
         w_out_ref, b_out_ref,
         out_ref, hid_ref,
         concat_sc, m_sc, l_sc, tmax_sc) = refs
    else:  # "dot"
        (emb_ref, h0_ref, enc_ref,
         w_ih_ref, w_hh_ref, b_ih_ref, b_hh_ref,
         w_cat_h_ref, w_cat_c_ref, b_cat_ref,
         w_out_ref, b_out_ref,
         out_ref, hid_ref,
         concat_sc, m_sc, l_sc, tmax_sc) = refs

    Hp = hidden_size_p
    j = pl.program_id(0)

    # ---------------- once per decode step: GRU cell + Luong attention + concat ----------------
    @pl.when(j == 0)
    def _():
        x = emb_ref[...]                                    # (Bp, Ep)  bf16
        h = h0_ref[...]                                     # (Bp, Hp)  f32
        h_bf = h.astype(jnp.bfloat16)

        gi = jnp.dot(x, w_ih_ref[...], preferred_element_type=jnp.float32) + b_ih_ref[...]
        gh = jnp.dot(h_bf, w_hh_ref[...], preferred_element_type=jnp.float32) + b_hh_ref[...]
        # PyTorch gate order: r, z, n (each gate block is Hp lanes wide -> aligned slices)
        r = jax.nn.sigmoid(gi[:, 0:Hp] + gh[:, 0:Hp])
        z = jax.nn.sigmoid(gi[:, Hp:2 * Hp] + gh[:, Hp:2 * Hp])
        n = jnp.tanh(gi[:, 2 * Hp:3 * Hp] + r * gh[:, 2 * Hp:3 * Hp])
        h_new = (1.0 - z) * n + z * h                       # (Bp, Hp) f32 == rnn_output
        hid_ref[...] = h_new

        enc = enc_ref[...].astype(jnp.float32)              # (Bp, Sp, Hp)

        if attn_method == "general":
            # score = enc @ W_attn @ h + b_attn . h  (refactored: key = h @ W_attn^T)
            key = jnp.dot(h_new.astype(jnp.bfloat16), w_attn_t_ref[...],
                          preferred_element_type=jnp.float32)            # (Bp, Hp)
            bias = jnp.sum(h_new * b_attn_ref[...], axis=-1, keepdims=True)  # (Bp, 1)
        else:
            key = h_new
            bias = None

        # VPU broadcast-multiply + XLU reductions (avoid Bp tiny M=1 MXU launches in the
        # latency-bound prologue).
        scores = jnp.sum(enc * key[:, None, :], axis=-1)                  # (Bp, Sp) f32
        if attn_method == "general":
            scores = scores + bias
        if seq_len_p > seq_len:
            s_idx = jax.lax.broadcasted_iota(jnp.int32, scores.shape, 1)
            scores = jnp.where(s_idx < seq_len, scores, _NEG_INF)

        scores = scores - jnp.max(scores, axis=-1, keepdims=True)
        p = jnp.exp(scores)
        attn_w = p * pl.reciprocal(jnp.sum(p, axis=-1, keepdims=True), approx=True)
        context = jnp.sum(attn_w[:, :, None] * enc, axis=1)               # (Bp, Hp) f32

        concat_out = jnp.tanh(
            jnp.dot(h_new.astype(jnp.bfloat16), w_cat_h_ref[...],
                    preferred_element_type=jnp.float32)
            + jnp.dot(context.astype(jnp.bfloat16), w_cat_c_ref[...],
                      preferred_element_type=jnp.float32)
            + b_cat_ref[...])
        concat_sc[...] = concat_out.astype(jnp.bfloat16)

        m_sc[...] = jnp.full(m_sc.shape, _NEG_INF, jnp.float32)
        l_sc[...] = jnp.zeros(l_sc.shape, jnp.float32)

    # ---------------- per vocab tile: projection + exp under running max (overlaps DMA) --------
    logits = jnp.dot(concat_sc[...], w_out_ref[...],
                     preferred_element_type=jnp.float32) + b_out_ref[...]   # (Bp, TILE_V)
    m_prev = m_sc[...]
    m_new = jnp.maximum(m_prev, jnp.max(logits, axis=-1, keepdims=True))
    p_tile = jnp.exp(logits - m_new)                                        # exp hidden under DMA
    col = pl.multiple_of(j * tile_v, tile_v)
    out_ref[:, pl.ds(col, tile_v)] = p_tile
    l_sc[...] = l_sc[...] * jnp.exp(m_prev - m_new) + jnp.sum(p_tile, axis=-1, keepdims=True)
    m_sc[...] = m_new
    tmax_sc[j] = m_new                                                      # per-tile running max

    # ---------------- finalize: cheap tiled VPU rescale (no full-vocab exp tail) ----------------
    @pl.when(j == pl.num_programs(0) - 1)
    def _():
        m_fin = m_sc[...]
        inv_l = pl.reciprocal(l_sc[...], approx=False)

        def rescale(i, carry):
            scale = jnp.exp(tmax_sc[i] - m_fin) * inv_l                     # (Bp, 1)
            c = pl.multiple_of(i * tile_v, tile_v)
            out_ref[:, pl.ds(c, tile_v)] = out_ref[:, pl.ds(c, tile_v)] * scale
            return carry

        jax.lax.fori_loop(0, n_tiles_v, rescale, 0)


# --------------------------------------------------------------------------------------
# One-time weight preparation (hoisted out of the per-step hot path)
# --------------------------------------------------------------------------------------
def prepare_params(params, attn_method="general", vmem_budget_bytes=None):
    """Pad & cast all weights once; returns (padded_params, static_meta)."""
    if attn_method not in ("dot", "general"):
        raise ValueError(attn_method)
    E = params["w_ih"].shape[0]
    H = params["w_hh"].shape[0]
    V = params["w_out"].shape[1]

    Hp = _round_up(H, 128)
    Ep = _round_up(E, 128)
    if vmem_budget_bytes is None:
        vmem_budget_bytes = _vmem_budget_bytes()

    # Streamed w_out tile: ~1-2 MiB per tile, 1024..4096 lanes, never wider than the vocab.
    tile_v = _round_up(max(1024, (2 << 20) // (Hp * 2)), 128)
    tile_v = min(tile_v, 4096, _round_up(V, 128))
    # Keep streamed buffers within ~1/4 of the VMEM budget.
    while tile_v > 256 and 3 * (Hp * tile_v * 2 + tile_v * 4) > vmem_budget_bytes // 4:
        tile_v = _round_up(tile_v // 2, 128)
    Vp = _round_up(V, tile_v)
    n_vt = Vp // tile_v
    n_buf = 3 if n_vt >= 3 else 2

    f32, bf16 = jnp.float32, jnp.bfloat16

    def pad_gru_w(w, in_pad):        # (in, 3H) -> (in_pad, 3*Hp), each gate padded separately
        blocks = [_pad2(w[:, g * H:(g + 1) * H], in_pad, Hp) for g in range(3)]
        return jnp.concatenate(blocks, axis=1).astype(bf16)

    def pad_gru_b(b):                # (1, 3H) -> (1, 3*Hp)
        blocks = [_pad2(b[:, g * H:(g + 1) * H], 1, Hp) for g in range(3)]
        return jnp.concatenate(blocks, axis=1).astype(f32)

    w_cat = params["w_cat"].astype(f32)
    padded = {
        # Embedding table pre-padded to Ep lanes and pre-cast to bf16 (gather stays in XLA).
        "embedding": jnp.pad(params["embedding"].astype(f32),
                             ((0, 0), (0, Ep - E))).astype(bf16),
        "w_ih": pad_gru_w(params["w_ih"].astype(f32), Ep),
        "w_hh": pad_gru_w(params["w_hh"].astype(f32), Hp),
        "b_ih": pad_gru_b(params["b_ih"].astype(f32)),
        "b_hh": pad_gru_b(params["b_hh"].astype(f32)),
        "w_cat_h": _pad2(w_cat[:H, :], Hp, Hp).astype(bf16),      # acts on rnn_output
        "w_cat_c": _pad2(w_cat[H:, :], Hp, Hp).astype(bf16),      # acts on context
        "b_cat": _pad2(params["b_cat"].astype(f32), 1, Hp),
        # Masking invariant: padded w_out columns are 0, padded b_out columns are -1e30.
        "w_out": _pad2(params["w_out"].astype(f32), Hp, Vp).astype(bf16),
        "b_out": _pad2(params["b_out"].astype(f32), 1, Vp, fill=_NEG_INF),
    }
    if attn_method == "general":
        padded["w_attn_t"] = _pad2(params["w_attn"].astype(f32).T, Hp, Hp).astype(bf16)
        padded["b_attn"] = _pad2(params["b_attn"].astype(f32), 1, Hp)

    meta = dict(E=E, H=H, V=V, Ep=Ep, Hp=Hp, Vp=Vp, tile_v=tile_v, n_vt=n_vt,
                n_buf=n_buf, attn_method=attn_method,
                vmem_budget=int(vmem_budget_bytes))
    return padded, meta


# --------------------------------------------------------------------------------------
# Per-step forward (jit this; padded params are passed through untouched)
# --------------------------------------------------------------------------------------
def luong_decoder_step(input_step, last_hidden, encoder_outputs, padded, meta):
    """input_step: (B,1) int32; last_hidden: (1,B,H); encoder_outputs: (B,S,H).

    Returns (softmax probs (B,V), hidden (1,B,H))."""
    B, S, H = encoder_outputs.shape
    Hp, Ep, Vp = meta["Hp"], meta["Ep"], meta["Vp"]
    tile_v, n_vt, n_buf = meta["tile_v"], meta["n_vt"], meta["n_buf"]
    attn_method, V = meta["attn_method"], meta["V"]

    Bp = _round_up(B, 16)            # 16 rows fill a packed-bf16 vreg sublane group
    Sp = _round_up(S, 8)
    f32, bf16 = jnp.float32, jnp.bfloat16

    # Per-step activation padding only (weights are already padded/cast).
    # TODO(synk): fuse this gather via PrefetchScalarGridSpec scalar-prefetched token ids.
    emb_p = jnp.pad(padded["embedding"][input_step[:, 0]], ((0, Bp - B), (0, 0)))
    h0_p = jnp.pad(last_hidden[0].astype(f32), ((0, Bp - B), (0, Hp - H)))
    enc_p = jnp.pad(encoder_outputs.astype(f32),
                    ((0, Bp - B), (0, Sp - S), (0, Hp - H))).astype(bf16)

    def full_spec(shape):
        nd = len(shape)
        return pl.BlockSpec(shape, lambda j, _nd=nd: (0,) * _nd)

    inputs = [emb_p, h0_p, enc_p,
              padded["w_ih"], padded["w_hh"], padded["b_ih"], padded["b_hh"]]
    if attn_method == "general":
        inputs += [padded["w_attn_t"], padded["b_attn"]]
    inputs += [padded["w_cat_h"], padded["w_cat_c"], padded["b_cat"]]
    in_specs = [full_spec(a.shape) for a in inputs]
    inputs += [padded["w_out"], padded["b_out"]]
    in_specs += [_streamed_spec((Hp, tile_v), lambda j: (0, j), n_buf),
                 _streamed_spec((1, tile_v), lambda j: (0, j), n_buf)]

    out_shape = (jax.ShapeDtypeStruct((Bp, Vp), f32),
                 jax.ShapeDtypeStruct((Bp, Hp), f32))
    out_specs = (pl.BlockSpec((Bp, Vp), lambda j: (0, 0)),     # resident probs block
                 pl.BlockSpec((Bp, Hp), lambda j: (0, 0)))     # resident hidden block
    scratch_shapes = [pltpu.VMEM((Bp, Hp), bf16),              # concat output cache
                      pltpu.VMEM((Bp, 1), f32),                # running max
                      pltpu.VMEM((Bp, 1), f32),                # running sum of exp
                      pltpu.VMEM((n_vt, Bp, 1), f32)]          # per-tile running max

    # VMEM limit: estimate, clamped to the per-generation budget (no hard 64 MiB clamp).
    small_bytes = sum(int(a.size) * a.dtype.itemsize for a in inputs[:-2])
    streamed_bytes = max(n_buf, 2) * (Hp * tile_v * 2 + tile_v * 4)
    out_bytes = Bp * Vp * 4 + Bp * Hp * 4
    scratch_bytes = Bp * Hp * 2 + 2 * Bp * 128 * 4 + n_vt * Bp * 128 * 4
    vmem_est = 2 * (small_bytes + out_bytes) + streamed_bytes + scratch_bytes + (4 << 20)
    vmem_limit = int(min(max(vmem_est, 16 << 20), meta["vmem_budget"]))

    kernel = functools.partial(_decoder_kernel, hidden_size_p=Hp, seq_len=S,
                               seq_len_p=Sp, tile_v=tile_v, n_tiles_v=n_vt,
                               attn_method=attn_method)

    probs_p, hid_p = pl.pallas_call(
        kernel,
        out_shape=out_shape,
        grid_spec=pltpu.PrefetchScalarGridSpec(
            num_scalar_prefetch=0,
            grid=(n_vt,),
            in_specs=in_specs,
            out_specs=out_specs,
            scratch_shapes=scratch_shapes),
        compiler_params=pltpu.CompilerParams(
            dimension_semantics=("arbitrary",),   # vocab axis carries the softmax accumulator
            vmem_limit_bytes=vmem_limit),
    )(*inputs)

    return probs_p[:B, :V], hid_p[:B, :H][None]


# --------------------------------------------------------------------------------------
# Pure-JAX reference (weights rounded to bf16 to mirror the kernel's weight storage)
# --------------------------------------------------------------------------------------
def reference_forward(input_step, last_hidden, encoder_outputs, params,
                      attn_method="general"):
    f32 = jnp.float32
    q = lambda w: w.astype(jnp.bfloat16).astype(f32)
    H = last_hidden.shape[-1]

    emb = params["embedding"][input_step[:, 0]].astype(f32)
    h = last_hidden[0].astype(f32)
    gi = emb @ q(params["w_ih"]) + params["b_ih"]
    gh = h @ q(params["w_hh"]) + params["b_hh"]
    r = jax.nn.sigmoid(gi[:, :H] + gh[:, :H])
    z = jax.nn.sigmoid(gi[:, H:2 * H] + gh[:, H:2 * H])
    n = jnp.tanh(gi[:, 2 * H:] + r * gh[:, 2 * H:])
    h_new = (1.0 - z) * n + z * h

    enc = encoder_outputs.astype(f32)
    if attn_method == "general":
        energy = enc @ q(params["w_attn"]) + params["b_attn"]
    else:
        energy = enc
    scores = jnp.einsum("bsh,bh->bs", energy, h_new)
    attn_w = jax.nn.softmax(scores, axis=1)
    context = jnp.einsum("bs,bsh->bh", attn_w, enc)

    concat_in = jnp.concatenate([h_new, context], axis=-1)
    concat_out = jnp.tanh(concat_in @ q(params["w_cat"]) + params["b_cat"])
    logits = concat_out @ q(params["w_out"]) + params["b_out"]
    return jax.nn.softmax(logits, axis=-1), h_new[None]


def init_params(key, num_tokens, embedding_size, hidden_size):
    E, H, V = embedding_size, hidden_size, num_tokens
    ks = jax.random.split(key, 12)
    s = 0.1
    return {
        "embedding": s * jax.random.normal(ks[0], (V, E), jnp.float32),
        "w_ih":      s * jax.random.normal(ks[1], (E, 3 * H), jnp.float32),
        "w_hh":      s * jax.random.normal(ks[2], (H, 3 * H), jnp.float32),
        "b_ih":      s * jax.random.normal(ks[3], (1, 3 * H), jnp.float32),
        "b_hh":      s * jax.random.normal(ks[4], (1, 3 * H), jnp.float32),
        "w_attn":    s * jax.random.normal(ks[5], (H, H), jnp.float32),
        "b_attn":    s * jax.random.normal(ks[6], (1, H), jnp.float32),
        "w_cat":     s * jax.random.normal(ks[7], (2 * H, H), jnp.float32),
        "b_cat":     s * jax.random.normal(ks[8], (1, H), jnp.float32),
        "w_out":     s * jax.random.normal(ks[9], (H, V), jnp.float32),
        "b_out":     s * jax.random.normal(ks[10], (1, V), jnp.float32),
    }


if __name__ == "__main__":
    B, S, E, H, V = 2, 8, 32, 32, 64

    key = jax.random.PRNGKey(0)
    k_p, k_in, k_h, k_enc = jax.random.split(key, 4)

    params = init_params(k_p, num_tokens=V, embedding_size=E, hidden_size=H)
    input_step = jax.random.randint(k_in, (B, 1), 0, V, dtype=jnp.int32)
    last_hidden = jax.random.normal(k_h, (1, B, H), jnp.float32)
    encoder_outputs = jax.random.normal(k_enc, (B, S, H), jnp.float32)

    # One-time weight padding/casting (hoisted out of the per-step hot path), then a
    # jitted per-step decode with the padded weights passed as plain pytree arguments.
    padded, meta = prepare_params(params, attn_method="general")
    step = jax.jit(lambda ids, h0, enc, pw: luong_decoder_step(ids, h0, enc, pw, meta))

    output, hidden = step(input_step, last_hidden, encoder_outputs, padded)
    jax.block_until_ready((output, hidden))

    ref_out, ref_hid = reference_forward(input_step, last_hidden, encoder_outputs,
                                         params, attn_method="general")

    assert output.shape == (B, V) and hidden.shape == (1, B, H)
    assert bool(jnp.all(jnp.isfinite(output))) and bool(jnp.all(jnp.isfinite(hidden)))
    assert bool(jnp.allclose(jnp.sum(output, axis=-1), 1.0, atol=1e-4))
    assert bool(jnp.allclose(output, ref_out, atol=1e-2, rtol=1e-2))
    assert bool(jnp.allclose(hidden, ref_hid, atol=1e-2, rtol=1e-2))
    print("KERNEL_OK")
</pallas_src>

<mosaic_0001>
module attributes {stable_mosaic.version = 11 : i64} {
  func.func @_decoder_kernel(%arg0: i32, %arg1: memref<16x128xbf16, #tpu.memory_space<vmem>>, %arg2: memref<16x128xf32, #tpu.memory_space<vmem>>, %arg3: memref<16x8x128xbf16, #tpu.memory_space<vmem>>, %arg4: memref<128x384xbf16, #tpu.memory_space<vmem>>, %arg5: memref<128x384xbf16, #tpu.memory_space<vmem>>, %arg6: memref<1x384xf32, #tpu.memory_space<vmem>>, %arg7: memref<1x384xf32, #tpu.memory_space<vmem>>, %arg8: memref<128x128xbf16, #tpu.memory_space<vmem>>, %arg9: memref<1x128xf32, #tpu.memory_space<vmem>>, %arg10: memref<128x128xbf16, #tpu.memory_space<vmem>>, %arg11: memref<128x128xbf16, #tpu.memory_space<vmem>>, %arg12: memref<1x128xf32, #tpu.memory_space<vmem>>, %arg13: memref<128x128xbf16, #tpu.memory_space<vmem>>, %arg14: memref<1x128xf32, #tpu.memory_space<vmem>>, %arg15: memref<16x128xf32, #tpu.memory_space<vmem>>, %arg16: memref<16x128xf32, #tpu.memory_space<vmem>>, %arg17: memref<16x128xbf16, #tpu.memory_space<vmem>>, %arg18: memref<16x1xf32, #tpu.memory_space<vmem>>, %arg19: memref<16x1xf32, #tpu.memory_space<vmem>>, %arg20: memref<1x16x1xf32, #tpu.memory_space<vmem>>) attributes {dimension_semantics = [#tpu.dimension_semantics<arbitrary>], iteration_bounds = array<i64: 1>, scalar_prefetch = 0 : i64, scratch_operands = 4 : i64, tpu.core_type = #tpu.core_type<tc>, window_params = [{pipeline_mode = #tpu.pipeline_mode<synchronous>, transform_indices = @transform_0, window_bounds = array<i64: 16, 128>}, {pipeline_mode = #tpu.pipeline_mode<synchronous>, transform_indices = @transform_1, window_bounds = array<i64: 16, 128>}, {pipeline_mode = #tpu.pipeline_mode<synchronous>, transform_indices = @transform_2, window_bounds = array<i64: 16, 8, 128>}, {pipeline_mode = #tpu.pipeline_mode<synchronous>, transform_indices = @transform_3, window_bounds = array<i64: 128, 384>}, {pipeline_mode = #tpu.pipeline_mode<synchronous>, transform_indices = @transform_4, window_bounds = array<i64: 128, 384>}, {pipeline_mode = #tpu.pipeline_mode<synchronous>, transform_indices = @transform_5, window_bounds = array<i64: 1, 384>}, {pipeline_mode = #tpu.pipeline_mode<synchronous>, transform_indices = @transform_6, window_bounds = array<i64: 1, 384>}, {pipeline_mode = #tpu.pipeline_mode<synchronous>, transform_indices = @transform_7, window_bounds = array<i64: 128, 128>}, {pipeline_mode = #tpu.pipeline_mode<synchronous>, transform_indices = @transform_8, window_bounds = array<i64: 1, 128>}, {pipeline_mode = #tpu.pipeline_mode<synchronous>, transform_indices = @transform_9, window_bounds = array<i64: 128, 128>}, {pipeline_mode = #tpu.pipeline_mode<synchronous>, transform_indices = @transform_10, window_bounds = array<i64: 128, 128>}, {pipeline_mode = #tpu.pipeline_mode<synchronous>, transform_indices = @transform_11, window_bounds = array<i64: 1, 128>}, {transform_indices = @transform_12, window_bounds = array<i64: 128, 128>}, {transform_indices = @transform_13, window_bounds = array<i64: 1, 128>}, {pipeline_mode = #tpu.pipeline_mode<synchronous>, transform_indices = @transform_14, window_bounds = array<i64: 16, 128>}, {pipeline_mode = #tpu.pipeline_mode<synchronous>, transform_indices = @transform_15, window_bounds = array<i64: 16, 128>}]} {
    %c0_i32 = arith.constant 0 : i32
    %0 = arith.cmpi eq, %arg0, %c0_i32 : i32
    %1 = arith.extui %0 : i1 to i32
    %c0_i32_0 = arith.constant 0 : i32
    %2 = arith.cmpi ne, %1, %c0_i32_0 : i32
    scf.if %2 {
      %c0_21 = arith.constant 0 : index
      %c0_22 = arith.constant 0 : index
      %36 = vector.load %arg1[%c0_21, %c0_22] : memref<16x128xbf16, #tpu.memory_space<vmem>>, vector<16x128xbf16>
      %c0_23 = arith.constant 0 : index
      %c0_24 = arith.constant 0 : index
      %37 = vector.load %arg2[%c0_23, %c0_24] : memref<16x128xf32, #tpu.memory_space<vmem>>, vector<16x128xf32>
      %38 = arith.truncf %37 : vector<16x128xf32> to vector<16x128xbf16>
      %c0_25 = arith.constant 0 : index
      %c0_26 = arith.constant 0 : index
      %39 = vector.load %arg4[%c0_25, %c0_26] : memref<128x384xbf16, #tpu.memory_space<vmem>>, vector<128x384xbf16>
      %cst_27 = arith.constant dense<0.000000e+00> : vector<16x384xf32>
      %40 = tpu.matmul %36, %39, %cst_27 {dimension_numbers = #tpu.dot_dimension_numbers<[1], [0], [0], [1], [0, 0, 1, 1], [], []>} : vector<16x128xbf16>, vector<128x384xbf16>, vector<16x384xf32> -> vector<16x384xf32>
      %c0_28 = arith.constant 0 : index
      %c0_29 = arith.constant 0 : index
      %41 = vector.load %arg6[%c0_28, %c0_29] : memref<1x384xf32, #tpu.memory_space<vmem>>, vector<1x384xf32>
      %42 = vector.broadcast %41 : vector<1x384xf32> to vector<16x384xf32>
      %43 = arith.addf %40, %42 : vector<16x384xf32>
      %c0_30 = arith.constant 0 : index
      %c0_31 = arith.constant 0 : index
      %44 = vector.load %arg5[%c0_30, %c0_31] : memref<128x384xbf16, #tpu.memory_space<vmem>>, vector<128x384xbf16>
      %cst_32 = arith.constant dense<0.000000e+00> : vector<16x384xf32>
      %45 = tpu.matmul %38, %44, %cst_32 {dimension_numbers = #tpu.dot_dimension_numbers<[1], [0], [0], [1], [0, 0, 1, 1], [], []>} : vector<16x128xbf16>, vector<128x384xbf16>, vector<16x384xf32> -> vector<16x384xf32>
      %c0_33 = arith.constant 0 : index
      %c0_34 = arith.constant 0 : index
      %46 = vector.load %arg7[%c0_33, %c0_34] : memref<1x384xf32, #tpu.memory_space<vmem>>, vector<1x384xf32>
      %47 = vector.broadcast %46 : vector<1x384xf32> to vector<16x384xf32>
      %48 = arith.addf %45, %47 : vector<16x384xf32>
      %49 = vector.extract_strided_slice %43 {offsets = [0, 0], sizes = [16, 128], strides = [1, 1]} : vector<16x384xf32> to vector<16x128xf32>
      %50 = vector.extract_strided_slice %48 {offsets = [0, 0], sizes = [16, 128], strides = [1, 1]} : vector<16x384xf32> to vector<16x128xf32>
      %51 = arith.addf %49, %50 : vector<16x128xf32>
      %52 = arith.negf %51 : vector<16x128xf32>
      %53 = math.exp %52 : vector<16x128xf32>
      %cst_35 = arith.constant 1.000000e+00 : f32
      %54 = vector.broadcast %cst_35 : f32 to vector<16x128xf32>
      %55 = arith.addf %54, %53 : vector<16x128xf32>
      %56 = arith.divf %54, %55 : vector<16x128xf32>
      %57 = vector.extract_strided_slice %43 {offsets = [0, 128], sizes = [16, 128], strides = [1, 1]} : vector<16x384xf32> to vector<16x128xf32>
      %58 = vector.extract_strided_slice %48 {offsets = [0, 128], sizes = [16, 128], strides = [1, 1]} : vector<16x384xf32> to vector<16x128xf32>
      %59 = arith.addf %57, %58 : vector<16x128xf32>
      %60 = arith.negf %59 : vector<16x128xf32>
      %61 = math.exp %60 : vector<16x128xf32>
      %cst_36 = arith.constant 1.000000e+00 : f32
      %62 = vector.broadcast %cst_36 : f32 to vector<16x128xf32>
      %63 = arith.addf %62, %61 : vector<16x128xf32>
      %64 = arith.divf %62, %63 : vector<16x128xf32>
      %65 = vector.extract_strided_slice %43 {offsets = [0, 256], sizes = [16, 128], strides = [1, 1]} : vector<16x384xf32> to vector<16x128xf32>
      %66 = vector.extract_strided_slice %48 {offsets = [0, 256], sizes = [16, 128], strides = [1, 1]} : vector<16x384xf32> to vector<16x128xf32>
      %67 = arith.mulf %56, %66 : vector<16x128xf32>
      %68 = arith.addf %65, %67 : vector<16x128xf32>
      %69 = math.tanh %68 : vector<16x128xf32>
      %cst_37 = arith.constant 1.000000e+00 : f32
      %70 = vector.broadcast %cst_37 : f32 to vector<16x128xf32>
      %71 = arith.subf %70, %64 : vector<16x128xf32>
      %72 = arith.mulf %71, %69 : vector<16x128xf32>
      %73 = arith.mulf %64, %37 : vector<16x128xf32>
      %74 = arith.addf %72, %73 : vector<16x128xf32>
      %c0_38 = arith.constant 0 : index
      %c0_39 = arith.constant 0 : index
      %75 = vector.load %arg16[%c0_38, %c0_39] : memref<16x128xf32, #tpu.memory_space<vmem>>, vector<16x128xf32>
      tpu.vector_store %arg16[%c0_38, %c0_39], %74 {strides = array<i32>} : memref<16x128xf32, #tpu.memory_space<vmem>>, vector<16x128xf32>,
      %c0_40 = arith.constant 0 : index
      %c0_41 = arith.constant 0 : index
      %c0_42 = arith.constant 0 : index
      %76 = vector.load %arg3[%c0_40, %c0_41, %c0_42] : memref<16x8x128xbf16, #tpu.memory_space<vmem>>, vector<16x8x128xbf16>
      %77 = arith.extf %76 : vector<16x8x128xbf16> to vector<16x8x128xf32>
      %78 = arith.truncf %74 : vector<16x128xf32> to vector<16x128xbf16>
      %c0_43 = arith.constant 0 : index
      %c0_44 = arith.constant 0 : index
      %79 = vector.load %arg8[%c0_43, %c0_44] : memref<128x128xbf16, #tpu.memory_space<vmem>>, vector<128x128xbf16>
      %cst_45 = arith.constant dense<0.000000e+00> : vector<16x128xf32>
      %80 = tpu.matmul %78, %79, %cst_45 {dimension_numbers = #tpu.dot_dimension_numbers<[1], [0], [0], [1], [0, 0, 1, 1], [], []>} : vector<16x128xbf16>, vector<128x128xbf16>, vector<16x128xf32> -> vector<16x128xf32>
      %c0_46 = arith.constant 0 : index
      %c0_47 = arith.constant 0 : index
      %81 = vector.load %arg9[%c0_46, %c0_47] : memref<1x128xf32, #tpu.memory_space<vmem>>, vector<1x128xf32>
      %82 = vector.broadcast %81 : vector<1x128xf32> to vector<16x128xf32>
      %83 = arith.mulf %74, %82 : vector<16x128xf32>
      %cst_48 = arith.constant dense<0.000000e+00> : vector<16xf32>
      %84 = vector.multi_reduction <add>, %83, %cst_48 [1] : vector<16x128xf32> to vector<16xf32>
      %85 = vector.shape_cast %84 : vector<16xf32> to vector<16x1xf32>
      %86 = vector.shape_cast %80 : vector<16x128xf32> to vector<16x1x128xf32>
      %87 = vector.broadcast %86 : vector<16x1x128xf32> to vector<16x8x128xf32>
      %88 = arith.mulf %77, %87 : vector<16x8x128xf32>
      %cst_49 = arith.constant dense<0.000000e+00> : vector<16x8xf32>
      %89 = vector.multi_reduction <add>, %88, %cst_49 [2] : vector<16x8x128xf32> to vector<16x8xf32>
      %90 = vector.broadcast %85 : vector<16x1xf32> to vector<16x8xf32>
      %91 = arith.addf %89, %90 : vector<16x8xf32>
      %cst_50 = arith.constant dense<0xFF800000> : vector<16xf32>
      %92 = vector.multi_reduction <maximumf>, %91, %cst_50 [1] : vector<16x8xf32> to vector<16xf32>
      %93 = vector.shape_cast %92 : vector<16xf32> to vector<16x1xf32>
      %94 = vector.broadcast %93 : vector<16x1xf32> to vector<16x8xf32>
      %95 = arith.subf %91, %94 : vector<16x8xf32>
      %96 = math.exp %95 : vector<16x8xf32>
      %cst_51 = arith.constant dense<0.000000e+00> : vector<16xf32>
      %97 = vector.multi_reduction <add>, %96, %cst_51 [1] : vector<16x8xf32> to vector<16xf32>
      %98 = vector.shape_cast %97 : vector<16xf32> to vector<16x1xf32>
      %99 = tpu.reciprocal %98 {approx = true} : vector<16x1xf32> -> vector<16x1xf32>
      %100 = vector.broadcast %99 : vector<16x1xf32> to vector<16x8xf32>
      %101 = arith.mulf %96, %100 : vector<16x8xf32>
      %102 = vector.shape_cast %101 : vector<16x8xf32> to vector<16x8x1xf32>
      %103 = vector.broadcast %102 : vector<16x8x1xf32> to vector<16x8x128xf32>
      %104 = arith.mulf %103, %77 : vector<16x8x128xf32>
      %cst_52 = arith.constant dense<0.000000e+00> : vector<16x128xf32>
      %105 = vector.multi_reduction <add>, %104, %cst_52 [1] : vector<16x8x128xf32> to vector<16x128xf32>
      %106 = arith.truncf %74 : vector<16x128xf32> to vector<16x128xbf16>
      %c0_53 = arith.constant 0 : index
      %c0_54 = arith.constant 0 : index
      %107 = vector.load %arg10[%c0_53, %c0_54] : memref<128x128xbf16, #tpu.memory_space<vmem>>, vector<128x128xbf16>
      %cst_55 = arith.constant dense<0.000000e+00> : vector<16x128xf32>
      %108 = tpu.matmul %106, %107, %cst_55 {dimension_numbers = #tpu.dot_dimension_numbers<[1], [0], [0], [1], [0, 0, 1, 1], [], []>} : vector<16x128xbf16>, vector<128x128xbf16>, vector<16x128xf32> -> vector<16x128xf32>
      %109 = arith.truncf %105 : vector<16x128xf32> to vector<16x128xbf16>
      %c0_56 = arith.constant 0 : index
      %c0_57 = arith.constant 0 : index
      %110 = vector.load %arg11[%c0_56, %c0_57] : memref<128x128xbf16, #tpu.memory_space<vmem>>, vector<128x128xbf16>
      %cst_58 = arith.constant dense<0.000000e+00> : vector<16x128xf32>
      %111 = tpu.matmul %109, %110, %cst_58 {dimension_numbers = #tpu.dot_dimension_numbers<[1], [0], [0], [1], [0, 0, 1, 1], [], []>} : vector<16x128xbf16>, vector<128x128xbf16>, vector<16x128xf32> -> vector<16x128xf32>
      %112 = arith.addf %108, %111 : vector<16x128xf32>
      %c0_59 = arith.constant 0 : index
      %c0_60 = arith.constant 0 : index
      %113 = vector.load %arg12[%c0_59, %c0_60] : memref<1x128xf32, #tpu.memory_space<vmem>>, vector<1x128xf32>
      %114 = vector.broadcast %113 : vector<1x128xf32> to vector<16x128xf32>
      %115 = arith.addf %112, %114 : vector<16x128xf32>
      %116 = math.tanh %115 : vector<16x128xf32>
      %117 = arith.truncf %116 : vector<16x128xf32> to vector<16x128xbf16>
      %c0_61 = arith.constant 0 : index
      %c0_62 = arith.constant 0 : index
      %118 = vector.load %arg17[%c0_61, %c0_62] : memref<16x128xbf16, #tpu.memory_space<vmem>>, vector<16x128xbf16>
      tpu.vector_store %arg17[%c0_61, %c0_62], %117 {strides = array<i32>} : memref<16x128xbf16, #tpu.memory_space<vmem>>, vector<16x128xbf16>,
      %cst_63 = arith.constant -1.000000e+30 : f32
      %119 = vector.broadcast %cst_63 : f32 to vector<16x1xf32>
      %c0_64 = arith.constant 0 : index
      %c0_65 = arith.constant 0 : index
      %120 = vector.load %arg18[%c0_64, %c0_65] : memref<16x1xf32, #tpu.memory_space<vmem>>, vector<16x1xf32>
      tpu.vector_store %arg18[%c0_64, %c0_65], %119 {strides = array<i32>} : memref<16x1xf32, #tpu.memory_space<vmem>>, vector<16x1xf32>,
      %cst_66 = arith.constant 0.000000e+00 : f32
      %121 = vector.broadcast %cst_66 : f32 to vector<16x1xf32>
      %c0_67 = arith.constant 0 : index
      %c0_68 = arith.constant 0 : index
      %122 = vector.load %arg19[%c0_67, %c0_68] : memref<16x1xf32, #tpu.memory_space<vmem>>, vector<16x1xf32>
      tpu.vector_store %arg19[%c0_67, %c0_68], %121 {strides = array<i32>} : memref<16x1xf32, #tpu.memory_space<vmem>>, vector<16x1xf32>,
    } else {
    }
    %c0 = arith.constant 0 : index
    %c0_1 = arith.constant 0 : index
    %3 = vector.load %arg17[%c0, %c0_1] : memref<16x128xbf16, #tpu.memory_space<vmem>>, vector<16x128xbf16>
    %c0_2 = arith.constant 0 : index
    %c0_3 = arith.constant 0 : index
    %4 = vector.load %arg13[%c0_2, %c0_3] : memref<128x128xbf16, #tpu.memory_space<vmem>>, vector<128x128xbf16>
    %cst = arith.constant dense<0.000000e+00> : vector<16x128xf32>
    %5 = tpu.matmul %3, %4, %cst {dimension_numbers = #tpu.dot_dimension_numbers<[1], [0], [0], [1], [0, 0, 1, 1], [], []>} : vector<16x128xbf16>, vector<128x128xbf16>, vector<16x128xf32> -> vector<16x128xf32>
    %c0_4 = arith.constant 0 : index
    %c0_5 = arith.constant 0 : index
    %6 = vector.load %arg14[%c0_4, %c0_5] : memref<1x128xf32, #tpu.memory_space<vmem>>, vector<1x128xf32>
    %7 = vector.broadcast %6 : vector<1x128xf32> to vector<16x128xf32>
    %8 = arith.addf %5, %7 : vector<16x128xf32>
    %c0_6 = arith.constant 0 : index
    %c0_7 = arith.constant 0 : index
    %9 = vector.load %arg18[%c0_6, %c0_7] : memref<16x1xf32, #tpu.memory_space<vmem>>, vector<16x1xf32>
    %cst_8 = arith.constant dense<0xFF800000> : vector<16xf32>
    %10 = vector.multi_reduction <maximumf>, %8, %cst_8 [1] : vector<16x128xf32> to vector<16xf32>
    %11 = vector.shape_cast %10 : vector<16xf32> to vector<16x1xf32>
    %12 = arith.maximumf %9, %11 : vector<16x1xf32>
    %13 = vector.broadcast %12 : vector<16x1xf32> to vector<16x128xf32>
    %14 = arith.subf %8, %13 : vector<16x128xf32>
    %15 = math.exp %14 : vector<16x128xf32>
    %c128_i32 = arith.constant 128 : i32
    %16 = arith.muli %arg0, %c128_i32 : i32
    %17 = tpu.assume_multiple %16, 128 : i32
    %c0_9 = arith.constant 0 : index
    %18 = arith.index_cast %17 : i32 to index
    %19 = vector.load %arg15[%c0_9, %18] : memref<16x128xf32, #tpu.memory_space<vmem>>, vector<16x128xf32>
    tpu.vector_store %arg15[%c0_9, %18], %15 {strides = array<i32>} : memref<16x128xf32, #tpu.memory_space<vmem>>, vector<16x128xf32>,
    %c0_10 = arith.constant 0 : index
    %c0_11 = arith.constant 0 : index
    %20 = vector.load %arg19[%c0_10, %c0_11] : memref<16x1xf32, #tpu.memory_space<vmem>>, vector<16x1xf32>
    %21 = arith.subf %9, %12 : vector<16x1xf32>
    %22 = math.exp %21 : vector<16x1xf32>
    %23 = arith.mulf %20, %22 : vector<16x1xf32>
    %cst_12 = arith.constant dense<0.000000e+00> : vector<16xf32>
    %24 = vector.multi_reduction <add>, %15, %cst_12 [1] : vector<16x128xf32> to vector<16xf32>
    %25 = vector.shape_cast %24 : vector<16xf32> to vector<16x1xf32>
    %26 = arith.addf %23, %25 : vector<16x1xf32>
    %c0_13 = arith.constant 0 : index
    %c0_14 = arith.constant 0 : index
    %27 = vector.load %arg19[%c0_13, %c0_14] : memref<16x1xf32, #tpu.memory_space<vmem>>, vector<16x1xf32>
    tpu.vector_store %arg19[%c0_13, %c0_14], %26 {strides = array<i32>} : memref<16x1xf32, #tpu.memory_space<vmem>>, vector<16x1xf32>,
    %c0_15 = arith.constant 0 : index
    %c0_16 = arith.constant 0 : index
    %28 = vector.load %arg18[%c0_15, %c0_16] : memref<16x1xf32, #tpu.memory_space<vmem>>, vector<16x1xf32>
    tpu.vector_store %arg18[%c0_15, %c0_16], %12 {strides = array<i32>} : memref<16x1xf32, #tpu.memory_space<vmem>>, vector<16x1xf32>,
    %29 = arith.index_cast %arg0 : i32 to index
    %c0_17 = arith.constant 0 : index
    %c0_18 = arith.constant 0 : index
    %30 = vector.load %arg20[%29, %c0_17, %c0_18] : memref<1x16x1xf32, #tpu.memory_space<vmem>>, vector<1x16x1xf32>
    %31 = vector.shape_cast %30 : vector<1x16x1xf32> to vector<16x1xf32>
    %32 = vector.shape_cast %12 : vector<16x1xf32> to vector<1x16x1xf32>
    tpu.vector_store %arg20[%29, %c0_17, %c0_18], %32 {strides = array<i32>} : memref<1x16x1xf32, #tpu.memory_space<vmem>>, vector<1x16x1xf32>,
    %c0_i32_19 = arith.constant 0 : i32
    %33 = arith.cmpi eq, %arg0, %c0_i32_19 : i32
    %34 = arith.extui %33 : i1 to i32
    %c0_i32_20 = arith.constant 0 : i32
    %35 = arith.cmpi ne, %34, %c0_i32_20 : i32
    scf.if %35 {
      %c0_21 = arith.constant 0 : index
      %c0_22 = arith.constant 0 : index
      %36 = vector.load %arg18[%c0_21, %c0_22] : memref<16x1xf32, #tpu.memory_space<vmem>>, vector<16x1xf32>
      %c0_23 = arith.constant 0 : index
      %c0_24 = arith.constant 0 : index
      %37 = vector.load %arg19[%c0_23, %c0_24] : memref<16x1xf32, #tpu.memory_space<vmem>>, vector<16x1xf32>
      %38 = tpu.reciprocal %37 : vector<16x1xf32> -> vector<16x1xf32>
      %c0_i32_25 = arith.constant 0 : i32
      %39 = arith.index_cast %c0_i32_25 : i32 to index
      %c0_26 = arith.constant 0 : index
      %c0_27 = arith.constant 0 : index
      %40 = vector.load %arg20[%39, %c0_26, %c0_27] : memref<1x16x1xf32, #tpu.memory_space<vmem>>, vector<1x16x1xf32>
      %41 = vector.shape_cast %40 : vector<1x16x1xf32> to vector<16x1xf32>
      %42 = arith.subf %41, %36 : vector<16x1xf32>
      %43 = math.exp %42 : vector<16x1xf32>
      %44 = arith.mulf %43, %38 : vector<16x1xf32>
      %c128_i32_28 = arith.constant 128 : i32
      %45 = arith.muli %c0_i32_25, %c128_i32_28 : i32
      %46 = tpu.assume_multiple %45, 128 : i32
      %c0_29 = arith.constant 0 : index
      %47 = arith.index_cast %46 : i32 to index
      %48 = vector.load %arg15[%c0_29, %47] : memref<16x128xf32, #tpu.memory_space<vmem>>, vector<16x128xf32>
      %49 = vector.broadcast %44 : vector<16x1xf32> to vector<16x128xf32>
      %50 = arith.mulf %48, %49 : vector<16x128xf32>
      %c0_30 = arith.constant 0 : index
      %51 = arith.index_cast %46 : i32 to index
      %52 = vector.load %arg15[%c0_30, %51] : memref<16x128xf32, #tpu.memory_space<vmem>>, vector<16x128xf32>
      tpu.vector_store %arg15[%c0_30, %51], %50 {strides = array<i32>} : memref<16x128xf32, #tpu.memory_space<vmem>>, vector<16x128xf32>,
      %c1_i32 = arith.constant 1 : i32
    } else {
    }
    return
  }
  func.func @transform_0(%arg0: i32) -> (i32, i32) {
    %c0_i32 = arith.constant 0 : i32
    %c0_i32_0 = arith.constant 0 : i32
    %c0_i32_1 = arith.constant 0 : i32
    return %c0_i32, %c0_i32_0 : i32, i32
  }
  func.func @transform_1(%arg0: i32) -> (i32, i32) {
    %c0_i32 = arith.constant 0 : i32
    %c0_i32_0 = arith.constant 0 : i32
    %c0_i32_1 = arith.constant 0 : i32
    return %c0_i32, %c0_i32_0 : i32, i32
  }
  func.func @transform_2(%arg0: i32) -> (i32, i32, i32) {
    %c0_i32 = arith.constant 0 : i32
    %c0_i32_0 = arith.constant 0 : i32
    %c0_i32_1 = arith.constant 0 : i32
    %c0_i32_2 = arith.constant 0 : i32
    return %c0_i32, %c0_i32_0, %c0_i32_1 : i32, i32, i32
  }
  func.func @transform_3(%arg0: i32) -> (i32, i32) {
    %c0_i32 = arith.constant 0 : i32
    %c0_i32_0 = arith.constant 0 : i32
    %c0_i32_1 = arith.constant 0 : i32
    return %c0_i32, %c0_i32_0 : i32, i32
  }
  func.func @transform_4(%arg0: i32) -> (i32, i32) {
    %c0_i32 = arith.constant 0 : i32
    %c0_i32_0 = arith.constant 0 : i32
    %c0_i32_1 = arith.constant 0 : i32
    return %c0_i32, %c0_i32_0 : i32, i32
  }
  func.func @transform_5(%arg0: i32) -> (i32, i32) {
    %c0_i32 = arith.constant 0 : i32
    %c0_i32_0 = arith.constant 0 : i32
    %c0_i32_1 = arith.constant 0 : i32
    return %c0_i32, %c0_i32_0 : i32, i32
  }
  func.func @transform_6(%arg0: i32) -> (i32, i32) {
    %c0_i32 = arith.constant 0 : i32
    %c0_i32_0 = arith.constant 0 : i32
    %c0_i32_1 = arith.constant 0 : i32
    return %c0_i32, %c0_i32_0 : i32, i32
  }
  func.func @transform_7(%arg0: i32) -> (i32, i32) {
    %c0_i32 = arith.constant 0 : i32
    %c0_i32_0 = arith.constant 0 : i32
    %c0_i32_1 = arith.constant 0 : i32
    return %c0_i32, %c0_i32_0 : i32, i32
  }
  func.func @transform_8(%arg0: i32) -> (i32, i32) {
    %c0_i32 = arith.constant 0 : i32
    %c0_i32_0 = arith.constant 0 : i32
    %c0_i32_1 = arith.constant 0 : i32
    return %c0_i32, %c0_i32_0 : i32, i32
  }
  func.func @transform_9(%arg0: i32) -> (i32, i32) {
    %c0_i32 = arith.constant 0 : i32
    %c0_i32_0 = arith.constant 0 : i32
    %c0_i32_1 = arith.constant 0 : i32
    return %c0_i32, %c0_i32_0 : i32, i32
  }
  func.func @transform_10(%arg0: i32) -> (i32, i32) {
    %c0_i32 = arith.constant 0 : i32
    %c0_i32_0 = arith.constant 0 : i32
    %c0_i32_1 = arith.constant 0 : i32
    return %c0_i32, %c0_i32_0 : i32, i32
  }
  func.func @transform_11(%arg0: i32) -> (i32, i32) {
    %c0_i32 = arith.constant 0 : i32
    %c0_i32_0 = arith.constant 0 : i32
    %c0_i32_1 = arith.constant 0 : i32
    return %c0_i32, %c0_i32_0 : i32, i32
  }
  func.func @transform_12(%arg0: i32) -> (i32, i32) {
    %c0_i32 = arith.constant 0 : i32
    %c0_i32_0 = arith.constant 0 : i32
    return %c0_i32, %arg0 : i32, i32
  }
  func.func @transform_13(%arg0: i32) -> (i32, i32) {
    %c0_i32 = arith.constant 0 : i32
    %c0_i32_0 = arith.constant 0 : i32
    return %c0_i32, %arg0 : i32, i32
  }
  func.func @transform_14(%arg0: i32) -> (i32, i32) {
    %c0_i32 = arith.constant 0 : i32
    %c0_i32_0 = arith.constant 0 : i32
    %c0_i32_1 = arith.constant 0 : i32
    return %c0_i32, %c0_i32_0 : i32, i32
  }
  func.func @transform_15(%arg0: i32) -> (i32, i32) {
    %c0_i32 = arith.constant 0 : i32
    %c0_i32_0 = arith.constant 0 : i32
    %c0_i32_1 = arith.constant 0 : i32
    return %c0_i32, %c0_i32_0 : i32, i32
  }
}

</mosaic_0001>

<bundles_post_ra>
// kernel: _lambda_.1
= control target key start
LH: loop header
LB: loop body
LE: loop exit
PB: predicated region body
PF: predicated region fallthrough
CT: control target
= control target key end

     0   :  { %21 = vsyncpa [#allocation7], 0  ;;  %s3771_s0 = inlined_call_operand.vmem [shape: bf16[16,128], index: 0, kind: input, shape index: {}]   ;;  %s3772_s1 = inlined_call_operand.vmem [shape: f32[16,128], index: 1, kind: input, shape index: {}]   ;;  %s3773_s2 = inlined_call_operand.vmem [shape: bf16[16,8,128], index: 2, kind: input, shape index: {}]   ;;  %s3774_s3 = inlined_call_operand.hbm [shape: bf16[128,384], index: 3, kind: input, shape index: {}]   ;;  %s3775_s4 = inlined_call_operand.hbm [shape: bf16[128,384], index: 4, kind: input, shape index: {}]   ;;  %s3776_s5 = inlined_call_operand.vmem [shape: f32[1,384], index: 5, kind: input, shape index: {}]   ;;  %s3777_s6 = inlined_call_operand.vmem [shape: f32[1,384], index: 6, kind: input, shape index: {}]   ;;  %s3778_s7 = inlined_call_operand.vmem [shape: bf16[128,128], index: 7, kind: input, shape index: {}]   ;;  %s3779_s8 = inlined_call_operand.vmem [shape: f32[1,128], index: 8, kind: input, shape index: {}]   ;;  %s3780_s9 = inlined_call_operand.vmem [shape: bf16[128,128], index: 9, kind: input, shape index: {}]   ;;  %s3781_s10 = inlined_call_operand.hbm [shape: bf16[128,128], index: 10, kind: input, shape index: {}]   ;;  %s3782_s11 = inlined_call_operand.vmem [shape: f32[1,128], index: 11, kind: input, shape index: {}]   ;;  %s3783_s12 = inlined_call_operand.hbm [shape: bf16[128,128], index: 12, kind: input, shape index: {}]   ;;  %s3784_s13 = inlined_call_operand.vmem [shape: f32[1,128], index: 13, kind: input, shape index: {}]   ;;  %s3785_s14 = inlined_call_operand.vmem [shape: f32[16,128], index: 14, kind: output, shape index: {0}]   ;;  %s3786_s15 = inlined_call_operand.vmem [shape: f32[16,128], index: 15, kind: output, shape index: {1}]  }
   0x1   :  { %22 = vsyncpa [#allocation9], 0 }
   0x2   :  { %23 = vsyncpa [#allocation12], 0  ;;  %s3003_s18 = smov [#allocation8]   ;;  %s3004_s20 = smov [#allocation6]  }
   0x3   :  { %s47_s19 = sshll.u32 %s3003_s18, 4  ;;  %s35_s21 = sshll.u32 %s3004_s20, 4  ;;  %s48_s19 = int_to_ptr.vmem [resolvable:$true] %s47_s19  ;;  %s36_s21 = int_to_ptr.vmem [resolvable:$true] %s35_s21 }
   0x4   :  { %s2925_s22 = scalar_lea.vmem %s48_s19, 3072  ;;  %p2930_p1 = scmp.lt.s32.totalorder %s48_s19, %s48_s19 }
   0x5   :  { %p2926_p0 = scmp.ne.s32.totalorder %s48_s19, %s2925_s22  ;;  %p2931_p2 = scmp.lt.s32.totalorder %s2925_s22, %s2925_s22 }
   0x7   :  { %p2932_p3 = por %p2931_p2, %p2930_p1 }
   0x9   :  { %p2933_p4 = pnand %p2932_p3, %p2926_p0 }
   0xb   :  { %2936 = shalt.err (!%p2933_p4)
}
   0xc   :  { %s3005_s23 = smov 192   ;;  %s3006_s24 = smov 12  }
   0xd   :  { %53 = dma.hbm_to_vmem [thread:$0]  %s3775_s4, 3072, %s48_s19, [#allocation9], %s3005_s23, %s3005_s23, %s3006_s24  }
   0xe   :  { %s2945_s27 = scalar_lea.vmem %s36_s21, 3072  ;;  %p2950_p6 = scmp.lt.s32.totalorder %s36_s21, %s36_s21 }
   0xf   :  { %p2946_p5 = scmp.ne.s32.totalorder %s36_s21, %s2945_s27  ;;  %p2951_p7 = scmp.lt.s32.totalorder %s2945_s27, %s2945_s27 }
  0x11   :  { %p2952_p8 = por %p2951_p7, %p2950_p6 }
  0x13   :  { %p2953_p9 = pnand %p2952_p8, %p2946_p5 }
  0x15   :  { %2956 = shalt.err (!%p2953_p9)
}
  0x16   :  { %41 = dma.hbm_to_vmem [thread:$0]  %s3774_s3, 3072, %s36_s21, [#allocation7], %s3005_s23, %s3005_s23, %s3006_s24  }
  0x17   :  { %s3007_s30 = smov [#allocation10]  }
  0x18   :  { %s69_s16 = sshll.u32 %s3007_s30, 4  ;;  %s70_s16 = int_to_ptr.vmem [resolvable:$true] %s69_s16 }
  0x19   :  { %s2965_s17 = scalar_lea.vmem %s70_s16, 1024  ;;  %p2970_p11 = scmp.lt.s32.totalorder %s70_s16, %s70_s16 }
  0x1a   :  { %p2966_p10 = scmp.ne.s32.totalorder %s70_s16, %s2965_s17  ;;  %p2971_p12 = scmp.lt.s32.totalorder %s2965_s17, %s2965_s17 }
  0x1c   :  { %p2972_p13 = por %p2971_p12, %p2970_p11 }
  0x1e   :  { %p2973_p0 = pnand %p2972_p13, %p2966_p10 }
  0x20   :  { %2976 = shalt.err (!%p2973_p0)
}
  0x21   :  { %s3008_s4 = smov 64   ;;  %s3009_s18 = smov 4  }
  0x22   :  { %75 = dma.hbm_to_vmem [thread:$0]  %s3781_s10, 1024, %s70_s16, [#allocation9], %s3008_s4, %s3008_s4, %s3009_s18  }
  0x23   :  { %s3010_s22 = smov [#allocation11]  }
  0x24   :  { %s83_s25 = sshll.u32 %s3010_s22, 4  ;;  %s84_s25 = int_to_ptr.vmem [resolvable:$true] %s83_s25 }
  0x25   :  { %s2985_s3 = scalar_lea.vmem %s84_s25, 1024  ;;  %p2990_p2 = scmp.lt.s32.totalorder %s84_s25, %s84_s25 }
  0x26   :  { %p2986_p1 = scmp.ne.s32.totalorder %s84_s25, %s2985_s3  ;;  %p2991_p3 = scmp.lt.s32.totalorder %s2985_s3, %s2985_s3 }
  0x28   :  { %p2992_p4 = por %p2991_p3, %p2990_p2 }
  0x2a   :  { %p2993_p5 = pnand %p2992_p4, %p2986_p1 }
  0x2c   :  { %2996 = shalt.err (!%p2993_p5)
}
  0x2d   :  { %89 = dma.hbm_to_vmem [thread:$0]  %s3783_s12, 1024, %s84_s25, [#allocation12], %s3008_s4, %s3008_s4, %s3009_s18  }
  0x2e   :  { %2997 = dma.done.wait [#allocation7], 3072  }
  0x2f   :  { %2998 = vsyncadd [#allocation7], 4294964224 }
  0x30   :  { %2999 = dma.done.wait [#allocation9], 4096  }
  0x31   :  { %3000 = vsyncadd [#allocation9], 4294963200 }
  0x32   :  { %3001 = dma.done.wait [#allocation12], 1024  }
  0x33   :  { %3002 = vsyncadd [#allocation12], 4294966272  ;;  %v3011_v0 = vmov 0.0   ;;  %v3012_v1 = vmov 0   ;;  %vm3013_vm0 = vmmov 0   ;;  %v2768_v25 = vld [vmem:[%s3771_s0] sm:$0xff]  }
  0x34   :  { %2608 = vmatprep.subr.bf16.mxu1 %v3011_v0  ;;  %329 = vmatprep.mubr.bf16.mxu0 %v3012_v1  ;;  %v2743_v2 = vld [vmem:[#allocation6 + $0xac] ss:$12 sps:$4 sm:$0xff]   ;;  %v2745_v3 = vld [vmem:[#allocation6 + $0xa8] ss:$12 sps:$4 sm:$0xff]   ;;  %v2748_v5 = vld [vmem:[#allocation6 + $0x90] ss:$12 sps:$4 sm:$0xff]  }
  0x35   :  { %2624 = vmatprep.mubr.msk.bf16.mxu1 %vm3013_vm0, %v3011_v0  ;;  %2741 = vset.pattern.permute.xlu0 %v3012_v1  ;;  %v2746_v4 = vld [vmem:[#allocation6 + $0x94] ss:$12 sps:$4 sm:$0xff]   ;;  %v2749_v6 = vld [vmem:[#allocation6 + $0x7c] ss:$12 sps:$4 sm:$0xff]   ;;  %v2751_v7 = vld [vmem:[#allocation6 + $0x78] ss:$12 sps:$4 sm:$0xff]  }
  0x36   :  { %2742 = vset.pattern.permute.xlu1 %v3012_v1  ;;  %297 = vmatprep.subr.bf16.mxu0 %v2743_v2  ;;  %v2752_v8 = vld [vmem:[#allocation6 + $0x64] ss:$12 sps:$4 sm:$0xff]   ;;  %v2754_v9 = vld [vmem:[#allocation6 + $0x60] ss:$12 sps:$4 sm:$0xff]   ;;  %v2757_v13 = vld [vmem:[#allocation6 + $0x48] ss:$12 sps:$4 sm:$0xff]  }
  0x37   :  { %298 = vmatpush1.bf16.msra.mxu0 %v2745_v3  ;;  %v2767_v10 = vld [vmem:[#allocation6 + $0xb0] ss:$12 sps:$4 sm:$0xff]   ;;  %v2755_v11 = vld [vmem:[#allocation6 + $0x4c] ss:$12 sps:$4 sm:$0xff]   ;;  %v2758_v14 = vld [vmem:[#allocation6 + $0x34] ss:$12 sps:$4 sm:$0xff]   ;;  %v148_v3 = vlaneseq }
  0x38   :  { %299 = vmatprep.subr.bf16.mxu0 %v2746_v4  ;;  %2609 = vmatpush3.bf16.msra.mxu1 %v2767_v10  ;;  %v2772_v12 = vld [vmem:[#allocation6 + $0x98] ss:$12 sps:$4 sm:$0xff]   ;;  %v2776_v15 = vld [vmem:[#allocation6 + $0x80] ss:$12 sps:$4 sm:$0xff]   ;;  %v2760_v16 = vld [vmem:[#allocation6 + $0x30] ss:$12 sps:$4 sm:$0xff]  }
  0x39   :  { %2610 = vmatprep.subr.bf16.mxu1 %v3011_v0  ;;  %v2761_v17 = vld [vmem:[#allocation6 + $0x1c] ss:$12 sps:$4 sm:$0xff]   ;;  %v2763_v19 = vld [vmem:[#allocation6 + $0x18] ss:$12 sps:$4 sm:$0xff]   ;;  %v2766_v22 = vld [vmem:[#allocation6] ss:$12 sps:$4 sm:$0xff]  }
  0x3a   :  { %v2780_v18 = vld [vmem:[#allocation6 + $0x68] ss:$12 sps:$4 sm:$0xff]   ;;  %v2764_v20 = vld [vmem:[#allocation6 + $0x4] ss:$12 sps:$4 sm:$0xff]   ;;  %v2771_v23 = vld [vmem:[#allocation8 + $0xac] ss:$12 sps:$4 sm:$0xff]  }
  0x3b   :  { %300 = vmatpush1.bf16.msra.mxu0 %v2748_v5  ;;  %v2784_v21 = vld [vmem:[#allocation6 + $0x50] ss:$12 sps:$4 sm:$0xff]   ;;  %v2788_v24 = vld [vmem:[#allocation6 + $0x38] ss:$12 sps:$4 sm:$0xff]   ;;  %v2769_v26 = vld [vmem:[#allocation8 + $0xa8] ss:$12 sps:$4 sm:$0xff]  }
  0x3c   :  { %301 = vmatprep.subr.bf16.mxu0 %v2749_v6  ;;  %2611 = vmatpush3.bf16.msra.mxu1 %v2772_v12  ;;  %v2775_v27 = vld [vmem:[#allocation8 + $0x94] ss:$12 sps:$4 sm:$0xff]   ;;  %v2773_v29 = vld [vmem:[#allocation8 + $0x90] ss:$12 sps:$4 sm:$0xff]   ;;  %v2777_v31 = vld [vmem:[#allocation8 + $0x78] ss:$12 sps:$4 sm:$0xff]  }
  0x3d   :  { %2612 = vmatprep.subr.bf16.mxu1 %v3011_v0  ;;  %v2792_v28 = vld [vmem:[#allocation6 + $0x20] ss:$12 sps:$4 sm:$0xff]   ;;  %v2779_v30 = vld [vmem:[#allocation8 + $0x7c] ss:$12 sps:$4 sm:$0xff]   ;;  %v2783_v33 = vld [vmem:[#allocation8 + $0x64] ss:$12 sps:$4 sm:$0xff]  }
  0x3e   :  { %v2796_v32 = vld [vmem:[#allocation6 + $0x8] ss:$12 sps:$4 sm:$0xff]   ;;  %v2800_v34 = vld [vmem:[#allocation8 + $0xb0] ss:$12 sps:$4 sm:$0xff]   ;;  %v2781_v35 = vld [vmem:[#allocation8 + $0x60] ss:$12 sps:$4 sm:$0xff]  }
  0x3f   :  { %302 = vmatpush1.bf16.msra.mxu0 %v2751_v7  ;;  %v2787_v36 = vld [vmem:[#allocation8 + $0x4c] ss:$12 sps:$4 sm:$0xff]   ;;  %v2785_v38 = vld [vmem:[#allocation8 + $0x48] ss:$12 sps:$4 sm:$0xff]   ;;  %v2789_v41 = vld [vmem:[#allocation8 + $0x30] ss:$12 sps:$4 sm:$0xff]  }
  0x40   :  { %303 = vmatprep.subr.bf16.mxu0 %v2752_v8  ;;  %2613 = vmatpush3.bf16.msra.mxu1 %v2776_v15  ;;  %v2801_v37 = vld [vmem:[#allocation8 + $0x98] ss:$12 sps:$4 sm:$0xff]   ;;  %v2791_v39 = vld [vmem:[#allocation8 + $0x34] ss:$12 sps:$4 sm:$0xff]   ;;  %v2795_v42 = vld [vmem:[#allocation8 + $0x1c] ss:$12 sps:$4 sm:$0xff]  }
  0x41   :  { %2614 = vmatprep.subr.bf16.mxu1 %v3011_v0  ;;  %v2802_v40 = vld [vmem:[#allocation8 + $0x80] ss:$12 sps:$4 sm:$0xff]   ;;  %v2803_v43 = vld [vmem:[#allocation8 + $0x68] ss:$12 sps:$4 sm:$0xff]   ;;  %v2793_v44 = vld [vmem:[#allocation8 + $0x18] ss:$12 sps:$4 sm:$0xff]  }
  0x42   :  { %v2799_v45 = vld [vmem:[#allocation8 + $0x4] ss:$12 sps:$4 sm:$0xff]   ;;  %v2797_v47 = vld [vmem:[#allocation8] ss:$12 sps:$4 sm:$0xff]   ;;  %v2807_v53 = vld [vmem:[#allocation8 + $0x8] ss:$12 sps:$4 sm:$0xff]  }
  0x43   :  { %304 = vmatpush1.bf16.msra.mxu0 %v2754_v9  ;;  %v2804_v46 = vld [vmem:[#allocation8 + $0x50] ss:$12 sps:$4 sm:$0xff]   ;;  %v3134_v48 = vld [vmem:[%s3772_s1] sm:$0xff]  ;;  %v2805_v50 = vld [vmem:[#allocation8 + $0x38] ss:$12 sps:$4 sm:$0xff]   ;;  %v3188_v5 = vshrl.u32 %v148_v3, 7 }
  0x44   :  { %305 = vmatprep.subr.bf16.mxu0 %v2755_v11  ;;  %2615 = vmatpush3.bf16.msra.mxu1 %v2780_v18  ;;  %v3139_v49 = vld [vmem:[%s3772_s1 + $0x8] sm:$0xff]  ;;  %v2806_v52 = vld [vmem:[#allocation8 + $0x20] ss:$12 sps:$4 sm:$0xff]   ;;  %v2809_v55 = vld [vmem:[%s3778_s7 + $0x30] sm:$0xff]   ;;  %vm1293_vm1 = vcmask 1041409   ;;  %vm1295_vm2 = vcmask 1042434  }
  0x45   :  { %2616 = vmatprep.subr.bf16.mxu1 %v3011_v0  ;;  %v113_v51 = vpack.c.bf16 %v3139_v49, %v3134_v48  ;;  %v2808_v54 = vld [vmem:[%s3778_s7 + $0x38] sm:$0xff]   ;;  %v2810_v56 = vld [vmem:[%s3778_s7 + $0x28] sm:$0xff]   ;;  %v2811_v57 = vld [vmem:[%s3778_s7 + $0x20] sm:$0xff]   ;;  %v3191_v7 = vsub.s32 0, %v3188_v5  ;;  %vm1297_vm3 = vcmask 1043459   ;;  %vm1299_vm4 = vcmask 1044484  }
  0x46   :  { %v2812_v58 = vld [vmem:[%s3778_s7 + $0x18] sm:$0xff]   ;;  %v2813_v59 = vld [vmem:[%s3778_s7 + $0x10] sm:$0xff]   ;;  %v2814_v60 = vld [vmem:[%s3778_s7 + $0x8] sm:$0xff]   ;;  %vm1301_vm5 = vcmask 1045509   ;;  %vm1303_vm6 = vcmask 1046534   ;;  %vm1305_vm7 = vcmask 1047559  }
  0x47   :  { %306 = vmatpush1.bf16.msra.mxu0 %v2757_v13  ;;  %v2815_v61 = vld [vmem:[%s3778_s7] sm:$0xff]   ;;  %vm1316_vm8 = vcmask 64512   ;;  %vm2190_vm9 = vcmask 7168  }
  0x48   :  { %307 = vmatprep.subr.bf16.mxu0 %v2758_v14  ;;  %2617 = vmatpush3.bf16.msra.mxu1 %v2784_v21  ;;  %v146_v8 = vld [vmem:[%s3776_s5] sm:$0x7]  ;;  %v3202_v14 = vsub.s32 1, %v3188_v5  ;;  %2193 = vst.msk [vmem:[#allocation4] sm:$0xff] %vm2190_vm9, %v3011_v0  ;;  %2194 = vst.msk [vmem:[#allocation4 + $0x8] sm:$0xff] %vm2190_vm9, %v3011_v0 }
  0x49   :  { %2618 = vmatprep.subr.bf16.mxu1 %v3011_v0  ;;  %v413_v10 = vld [vmem:[%s3777_s6] sm:$0x7]  ;;  %v151_v11 = vrot.slane %v146_v8, %v3191_v7 }
  0x4a   :  { %v418_v12 = vrot.slane %v413_v10, %v3191_v7  ;;  %v422_v18 = vrot.slane %v413_v10, %v3202_v14 }
  0x4b   :  { %308 = vmatpush1.bf16.msra.mxu0 %v2760_v16 }
  0x4c   :  { %309 = vmatprep.subr.bf16.mxu0 %v2761_v17  ;;  %2619 = vmatpush3.bf16.msra.mxu1 %v2788_v24 }
  0x4d   :  { %2620 = vmatprep.subr.bf16.mxu1 %v3011_v0 }
  0x4f   :  { %310 = vmatpush1.bf16.msra.mxu0 %v2763_v19 }
  0x50   :  { %311 = vmatprep.subr.bf16.mxu0 %v2764_v20  ;;  %2621 = vmatpush3.bf16.msra.mxu1 %v2792_v28  ;;  %v155_v20 = vrot.slane %v146_v8, %v3202_v14 }
  0x51   :  { %2622 = vmatprep.subr.bf16.mxu1 %v3011_v0 }
  0x53   :  { %312 = vmatpush1.bf16.msra.mxu0 %v2766_v22 }
  0x54   :  { %558 = vmatprep.subr.bf16.mxu0 %v2771_v23  ;;  %2623 = vmatpush3.bf16.msra.mxu1 %v2796_v32 }
  0x55   :  { %2628 = vmatprep.subr.bf16.mxu1 %v3011_v0 }
  0x56   :  { %330 = vmatmul.mubr.bf16.vlgmr.msra.gmra.mxu0 %v2768_v25 }
  0x57   :  { %559 = vmatpush1.bf16.msra.mxu0 %v2769_v26  ;;  %590 = vmatprep.mubr.bf16.mxu0 %v3012_v1 }
  0x58   :  { %560 = vmatprep.subr.bf16.mxu0 %v2775_v27  ;;  %2625 = vmatmul.mubr.bf16.vlgmr.msra.gmra.mxu1 %v2768_v25 }
  0x59   :  { %2629 = vmatpush3.bf16.msra.mxu1 %v2800_v34  ;;  %2644 = vmatprep.mubr.msk.bf16.mxu1 %vm3013_vm0, %v3011_v0 }
  0x5a   :  { %2630 = vmatprep.subr.bf16.mxu1 %v3011_v0 }
  0x5b   :  { %561 = vmatpush1.bf16.msra.mxu0 %v2773_v29 }
  0x5c   :  { %562 = vmatprep.subr.bf16.mxu0 %v2779_v30 }
  0x5d   :  { %2631 = vmatpush3.bf16.msra.mxu1 %v2801_v37 }
  0x5e   :  { %2632 = vmatprep.subr.bf16.mxu1 %v3011_v0 }
  0x5f   :  { %563 = vmatpush1.bf16.msra.mxu0 %v2777_v31 }
  0x60   :  { %564 = vmatprep.subr.bf16.mxu0 %v2783_v33 }
  0x61   :  { %2633 = vmatpush3.bf16.msra.mxu1 %v2802_v40 }
  0x62   :  { %2634 = vmatprep.subr.bf16.mxu1 %v3011_v0 }
  0x63   :  { %565 = vmatpush1.bf16.msra.mxu0 %v2781_v35 }
  0x64   :  { %566 = vmatprep.subr.bf16.mxu0 %v2787_v36 }
  0x65   :  { %2635 = vmatpush3.bf16.msra.mxu1 %v2803_v43 }
  0x66   :  { %2636 = vmatprep.subr.bf16.mxu1 %v3011_v0 }
  0x67   :  { %567 = vmatpush1.bf16.msra.mxu0 %v2785_v38 }
  0x68   :  { %568 = vmatprep.subr.bf16.mxu0 %v2791_v39 }
  0x69   :  { %2637 = vmatpush3.bf16.msra.mxu1 %v2804_v46 }
  0x6a   :  { %2638 = vmatprep.subr.bf16.mxu1 %v3011_v0 }
  0x6b   :  { %569 = vmatpush1.bf16.msra.mxu0 %v2789_v41 }
  0x6c   :  { %570 = vmatprep.subr.bf16.mxu0 %v2795_v42 }
  0x6d   :  { %2639 = vmatpush3.bf16.msra.mxu1 %v2805_v50 }
  0x6e   :  { %2640 = vmatprep.subr.bf16.mxu1 %v3011_v0 }
  0x6f   :  { %571 = vmatpush1.bf16.msra.mxu0 %v2793_v44 }
  0x70   :  { %572 = vmatprep.subr.bf16.mxu0 %v2799_v45  ;;  %v3207_v45 = vsub.s32 2, %v3188_v5 }
  0x71   :  { %2641 = vmatpush3.bf16.msra.mxu1 %v2806_v52 }
  0x72   :  { %2642 = vmatprep.subr.bf16.mxu1 %v3011_v0  ;;  %v426_v46 = vrot.slane %v413_v10, %v3207_v45 }
  0x73   :  { %573 = vmatpush1.bf16.msra.mxu0 %v2797_v47 }
  0x74   :  { %2648 = vmatprep.subr.bf16.mxu0 %v3011_v0 }
  0x75   :  { %2643 = vmatpush3.bf16.msra.mxu1 %v2807_v53 }
  0x76   :  { %591 = vmatmul.mubr.bf16.vlgmr.msra.gmra.mxu0 %v113_v51  ;;  %2668 = vmatprep.subr.bf16.mxu1 %v3011_v0 }
  0x77   :  { %2664 = vmatprep.mubr.msk.bf16.mxu0 %vm3013_vm0, %v3011_v0  ;;  %2649 = vmatpush3.bf16.msra.mxu0 %v2808_v54 }
  0x78   :  { %2645 = vmatmul.mubr.bf16.vlgmr.msra.gmra.mxu1 %v113_v51  ;;  %2650 = vmatprep.subr.bf16.mxu0 %v3011_v0  ;;  %v159_v51 = vrot.slane %v146_v8, %v3207_v45 }
  0x79   :  { %2684 = vmatprep.mubr.msk.bf16.mxu1 %vm3013_vm0, %v3011_v0 }
  0x7b   :  { %2651 = vmatpush3.bf16.msra.mxu0 %v2809_v55 }
  0x7c   :  { %2652 = vmatprep.subr.bf16.mxu0 %v3011_v0 }
  0x7f   :  { %2653 = vmatpush3.bf16.msra.mxu0 %v2810_v56 }
  0x80   :  { %2654 = vmatprep.subr.bf16.mxu0 %v3011_v0 }
  0x83   :  { %2655 = vmatpush3.bf16.msra.mxu0 %v2811_v57 }
  0x84   :  { %2656 = vmatprep.subr.bf16.mxu0 %v3011_v0 }
  0x87   :  { %2657 = vmatpush3.bf16.msra.mxu0 %v2812_v58 }
  0x88   :  { %2658 = vmatprep.subr.bf16.mxu0 %v3011_v0 }
  0x8b   :  { %2659 = vmatpush3.bf16.msra.mxu0 %v2813_v59 }
  0x8c   :  { %2660 = vmatprep.subr.bf16.mxu0 %v3011_v0 }
  0x8f   :  { %2661 = vmatpush3.bf16.msra.mxu0 %v2814_v60 }
  0x90   :  { %2662 = vmatprep.subr.bf16.mxu0 %v3011_v0 }
  0x93   :  { %2663 = vmatpush3.bf16.msra.mxu0 %v2815_v61 }
  0x94   :  { %2688 = vmatprep.subr.bf16.mxu0 %v3011_v0 }
 0x116   :  { %v331_v4 = vpop.f32.mrf.mxu0 }
 0x117   :  { %v332_v16 = vadd.f32 %v331_v4, %v151_v11 }
 0x118   :  { %v374_v62 = vpop.f32.mrf.mxu1  ;;  %v333_v6 = vpop.f32.mrf.mxu0 }
 0x119   :  { %v334_v28 = vadd.f32 %v333_v6, %v155_v20  ;;  %v375_v56 = vadd.f32 %v374_v62, %v159_v51  ;;  %v2478_v62 = vld [vmem:[%s3779_s8] ss:$0 sm:$0xff] }
 0x11a   :  { %v2626_v63 = vpop.f32.mrf.mxu1  ;;  %v335_v9 = vpop.f32.mrf.mxu0 }
 0x11b   :  { %v336_v23 = vadd.f32 %v335_v9, %v151_v11 }
 0x11c   :  { %v3185_v1 = vpop.f32.mrf.mxu1  ;;  %v337_v13 = vpop.f32.mrf.mxu0 }
 0x11d   :  { %v338_v33 = vadd.f32 %v337_v13, %v155_v20  ;;  %v378_v61 = vadd.f32 %v3185_v1, %v159_v51 }
 0x11e   :  { %v2627_v2 = vpop.f32.mrf.mxu1 }
 0x136   :  { %v592_v15 = vpop.f32.mrf.mxu0 }
 0x137   :  { %v593_v17 = vadd.f32 %v592_v15, %v418_v12 }
 0x138   :  { %v594_v19 = vpop.f32.mrf.mxu0  ;;  %v635_v34 = vpop.f32.mrf.mxu1 }
 0x139   :  { %v642_v21 = vadd.f32 %v593_v17, %v332_v16  ;;  %v595_v25 = vadd.f32 %v594_v19, %v422_v18  ;;  %v636_v53 = vadd.f32 %v635_v34, %v426_v46 }
 0x13a   :  { %v596_v22 = vpop.f32.mrf.mxu0  ;;  %v2646_v36 = vpop.f32.mrf.mxu1 }
 0x13b   :  { %v2466_v24 = vmul.f32 -1.442695, %v642_v21  ;;  %v597_v26 = vadd.f32 %v596_v22, %v418_v12  ;;  %v656_v31 = vadd.f32 %v595_v25, %v334_v28  ;;  %v2817_v21 = vld [vmem:[%s3780_s9 + $0x30] sm:$0xff]   ;;  %v2819_v22 = vld [vmem:[%s3780_s9 + $0x20] sm:$0xff]   ;;  %v2822_v25 = vld [vmem:[%s3780_s9 + $0x8] sm:$0xff]  }
 0x13c   :  { %v598_v27 = vpop.f32.mrf.mxu0  ;;  %v638_v38 = vpop.f32.mrf.mxu1  ;;  %v3268_v36 = vld [vmem:[%s3773_s2 + $0x8] sm:$0xff]  }
 0x13d   :  { %2841 = vpow2.f32 %v2466_v24  ;;  %v643_v29 = vadd.f32 %v597_v26, %v336_v23  ;;  %v599_v30 = vadd.f32 %v598_v27, %v422_v18  ;;  %v2468_v37 = vmul.f32 -1.442695, %v656_v31  ;;  %v2820_v23 = vld [vmem:[%s3780_s9 + $0x18] sm:$0xff]   ;;  %v2821_v24 = vld [vmem:[%s3780_s9 + $0x10] sm:$0xff]   ;;  %v2823_v26 = vld [vmem:[%s3780_s9] sm:$0xff]  }
 0x13e   :  { %v2647_v40 = vpop.f32.mrf.mxu1  ;;  %v639_v59 = vadd.f32 %v638_v38, %v426_v46  ;;  %v3014_v27 = vmov 1966171168  }
 0x13f   :  { %v2467_v32 = vmul.f32 -1.442695, %v643_v29  ;;  %v657_v35 = vadd.f32 %v599_v30, %v338_v33  ;;  %v841_v28 = vunpack.c.l.s4 %v3014_v27 }
 0x141   :  { %2843 = vpow2.f32 %v2467_v32  ;;  %v2469_v39 = vmul.f32 -1.442695, %v657_v35  ;;  %v842_v29 = vunpack.c.0.s8 %v841_v28  ;;  %v3262_v32 = vld [vmem:[%s3773_s2] sm:$0xff]  }
 0x142   :  { %2845 = vpow2.f32 %v2468_v37  ;;  %v2512_v40 = vunpack.c.l.bf16 %v3262_v32 }
 0x143   :  { %2847 = vpow2.f32 %v2469_v39  ;;  %v3257_v30 = vsub.s32 %v842_v29, %v3188_v5 }
 0x14a   :  { %v2842_v41 = vpop.eup %2841 }
 0x14b   :  { %v650_v42 = vadd.f32 1.0, %v2842_v41 }
 0x14d   :  { %2849 = vrcp.f32 %v650_v42 }
 0x14e   :  { %v2844_v43 = vpop.eup %2843 }
 0x14f   :  { %v651_v44 = vadd.f32 1.0, %v2844_v43  ;;  %v2846_v47 = vpop.eup %2845 }
 0x150   :  { %v2848_v50 = vpop.eup %2847  ;;  %v664_v52 = vadd.f32 1.0, %v2846_v47 }
 0x151   :  { %2851 = vrcp.f32 %v651_v44  ;;  %v665_v55 = vadd.f32 1.0, %v2848_v50  ;;  %v2516_v44 = vunpack.c.l.bf16 %v3268_v36  ;;  %v2513_v50 = vunpack.c.h.bf16 %v3262_v32 }
 0x152   :  { %2853 = vrcp.f32 %v664_v52 }
 0x153   :  { %2855 = vrcp.f32 %v665_v55 }
 0x15a   :  { %v2850_v54 = vpop.eup %2849 }
 0x15b   :  { %v670_v57 = vmul.f32 %v2850_v54, %v636_v53 }
 0x15d   :  { %v672_v58 = vadd.f32 %v670_v57, %v375_v56  ;;  %v3285_v57 = vld [vmem:[%s3773_s2 + $0x10] sm:$0xff]  }
 0x15e   :  { %v2852_v60 = vpop.eup %2851 }
 0x15f   :  { %2857 = vtanh.f32 %v672_v58  ;;  %v671_v63 = vmul.f32 %v2852_v60, %v639_v59  ;;  %v2854_v4 = vpop.eup %2853  ;;  %v3292_v60 = vld [vmem:[%s3773_s2 + $0x20] sm:$0xff]  }
 0x160   :  { %v2856_v6 = vpop.eup %2855  ;;  %v676_v8 = vsub.f32 1.0, %v2854_v4  ;;  %v680_v11 = vmul.f32 %v2854_v4, %v3134_v48  ;;  %v2816_v48 = vld [vmem:[%s3780_s9 + $0x38] sm:$0xff]  }
 0x161   :  { %v673_v2 = vadd.f32 %v671_v63, %v378_v61  ;;  %v677_v13 = vsub.f32 1.0, %v2856_v6  ;;  %v681_v17 = vmul.f32 %v2856_v6, %v3139_v49  ;;  %v2818_v49 = vld [vmem:[%s3780_s9 + $0x28] sm:$0xff]   ;;  %v2529_v6 = vunpack.c.h.bf16 %v3292_v60 }
 0x163   :  { %2859 = vtanh.f32 %v673_v2  ;;  %v3796_v2 = vunpack.c.l.bf16 %v3285_v57 }
 0x16c   :  { %v2858_v9 = vpop.eup %2857 }
 0x16d   :  { %v678_v10 = vmul.f32 %v2858_v9, %v676_v8 }
 0x16f   :  { %v682_v12 = vadd.f32 %v680_v11, %v678_v10 }
 0x170   :  { %v2860_v15 = vpop.eup %2859 }
 0x171   :  { %v831_v16 = vmul.f32 %v2478_v62, %v682_v12  ;;  %684 = vst [vmem:[%s3786_s15] sm:$0xff] %v682_v12  ;;  %v679_v1 = vmul.f32 %v2860_v15, %v677_v13 }
 0x173   :  { %833 = vadd.xlane.f32.xlu0 %v831_v16  ;;  %v683_v18 = vadd.f32 %v681_v17, %v679_v1 }
 0x175   :  { %685 = vst [vmem:[%s3786_s15 + $0x8] sm:$0xff] %v683_v18  ;;  %v832_v19 = vmul.f32 %v2478_v62, %v683_v18  ;;  %v718_v20 = vpack.c.bf16 %v683_v18, %v682_v12  ;;  %v3307_v62 = vld [vmem:[%s3773_s2 + $0x28] sm:$0xff]   ;;  %v3792_v12 = vunpack.c.l.bf16 %v3292_v60 }
 0x176   :  { %v3797_v18 = vunpack.c.l.bf16 %v3307_v62 }
 0x177   :  { %835 = vadd.xlane.f32.xlu0 %v832_v19  ;;  %2665 = vmatmul.mubr.bf16.vlgmr.msra.gmra.mxu0 %v718_v20  ;;  %v3320_v19 = vld [vmem:[%s3773_s2 + $0x30] sm:$0xff]  }
 0x178   :  { %2689 = vmatpush3.bf16.msra.mxu0 %v2816_v48  ;;  %2704 = vmatprep.mubr.msk.bf16.mxu0 %vm3013_vm0, %v3011_v0 }
 0x179   :  { %2690 = vmatprep.subr.bf16.mxu0 %v3011_v0 }
 0x17c   :  { %2691 = vmatpush3.bf16.msra.mxu0 %v2817_v21  ;;  %v2517_v21 = vunpack.c.h.bf16 %v3268_v36  ;;  %v3800_v36 = vunpack.c.h.bf16 %v3307_v62 }
 0x17d   :  { %2692 = vmatprep.subr.bf16.mxu0 %v3011_v0 }
 0x180   :  { %2693 = vmatpush3.bf16.msra.mxu0 %v2818_v49 }
 0x181   :  { %2694 = vmatprep.subr.bf16.mxu0 %v3011_v0 }
 0x184   :  { %2695 = vmatpush3.bf16.msra.mxu0 %v2819_v22 }
 0x185   :  { %2696 = vmatprep.subr.bf16.mxu0 %v3011_v0 }
 0x188   :  { %2697 = vmatpush3.bf16.msra.mxu0 %v2820_v23  ;;  %v3793_v23 = vunpack.c.l.bf16 %v3320_v19 }
 0x189   :  { %2698 = vmatprep.subr.bf16.mxu0 %v3011_v0 }
 0x18c   :  { %2699 = vmatpush3.bf16.msra.mxu0 %v2821_v24 }
 0x18d   :  { %2700 = vmatprep.subr.bf16.mxu0 %v3011_v0 }
 0x190   :  { %2701 = vmatpush3.bf16.msra.mxu0 %v2822_v25 }
 0x191   :  { %2702 = vmatprep.subr.bf16.mxu0 %v3011_v0 }
 0x194   :  { %2703 = vmatpush3.bf16.msra.mxu0 %v2823_v26 }
 0x197   :  { %2705 = vmatmul.mubr.bf16.vlgmr.msra.gmra.mxu0 %v718_v20 }
 0x237   :  { %v817_v31 = vpop.f32.mrf.mxu0 }
 0x238   :  { %v839_v33 = vcombine.high %v817_v31, %v817_v31  ;;  %v846_v34 = vrot.slane %v817_v31, %v3257_v30  ;;  %v3794_v31 = vunpack.c.h.bf16 %v3285_v57 }
 0x239   :  { %v2666_v35 = vpop.f32.mrf.mxu0 }
 0x23a   :  { %v853_v37 = vrot.slane %v839_v33, %v3257_v30  ;;  %v854_v38 = vcombine.high %v846_v34, %v846_v34  ;;  %v862_v39 = vrot.slane %v846_v34, %v3257_v30 }
 0x23b   :  { %v820_v41 = vpop.f32.mrf.mxu0 }
 0x23c   :  { %v895_v42 = vrot.slane %v820_v41, %v3257_v30  ;;  %v940_v43 = vrot.slane %v862_v39, %v3191_v7  ;;  %v884_v47 = vcombine.high %v862_v39, %v862_v39  ;;  %v876_v51 = vrot.slane %v854_v38, %v3257_v30  ;;  %v3343_v39 = vld [vmem:[%s3773_s2 + $0x18] sm:$0xff]  }
 0x23d   :  { %v2667_v46 = vpop.f32.mrf.mxu0  ;;  %v869_v52 = vrot.slane %v853_v37, %v3257_v30  ;;  %v888_v53 = vcombine.high %v820_v41, %v820_v41  ;;  %v855_v13 = vcombine.high %v853_v37, %v853_v37  ;;  %v3795_v37 = vunpack.c.h.bf16 %v3307_v62 }
 0x23e   :  { %v903_v54 = vcombine.high %v895_v42, %v895_v42  ;;  %v911_v55 = vrot.slane %v895_v42, %v3257_v30  ;;  %v1017_v56 = vmul.f32 %v2512_v40, %v940_v43  ;;  %v948_v58 = vrot.slane %v884_v47, %v3191_v7 }
 0x23f   :  { %v944_v59 = vrot.slane %v876_v51, %v3191_v7  ;;  %v956_v4 = vrot.slane %v869_v52, %v3191_v7  ;;  %v902_v8 = vrot.slane %v888_v53, %v3257_v30  ;;  %v886_v1 = vcombine.high %v876_v51, %v876_v51 }
 0x240   :  { %1033 = vadd.xlane.f32.xlu1 %v1017_v56  ;;  %v925_v61 = vrot.slane %v903_v54, %v3257_v30  ;;  %v1019_v63 = vmul.f32 %v2516_v44, %v948_v58  ;;  %v933_v11 = vcombine.high %v911_v55, %v911_v55  ;;  %v972_v16 = vrot.slane %v911_v55, %v3191_v7 }
 0x241   :  { %v1018_v9 = vmul.f32 %v2513_v50, %v944_v59  ;;  %v1021_v15 = vmul.f32 %v3796_v2, %v956_v4  ;;  %v918_v20 = vrot.slane %v902_v8, %v3257_v30  ;;  %v952_v22 = vrot.slane %v886_v1, %v3191_v7 }
 0x242   :  { %v976_v10 = vrot.slane %v925_v61, %v3191_v7  ;;  %1037 = vadd.xlane.f32.xlu0 %v1019_v63  ;;  %v980_v48 = vrot.slane %v933_v11, %v3191_v7  ;;  %v1025_v49 = vmul.f32 %v3792_v12, %v972_v16  ;;  %v883_v24 = vrot.slane %v855_v13, %v3257_v30 }
 0x243   :  { %v904_v25 = vcombine.high %v902_v8, %v902_v8  ;;  %v988_v27 = vrot.slane %v918_v20, %v3191_v7  ;;  %v935_v28 = vcombine.high %v925_v61, %v925_v61  ;;  %v1020_v29 = vmul.f32 %v2517_v21, %v952_v22 }
 0x244   :  { %1035 = vadd.xlane.f32.xlu1 %v1018_v9  ;;  %v1026_v17 = vmul.f32 %v2529_v6, %v976_v10  ;;  %v1027_v26 = vmul.f32 %v3797_v18, %v980_v48  ;;  %v960_v33 = vrot.slane %v883_v24, %v3191_v7  ;;  %v885_v34 = vcombine.high %v869_v52, %v869_v52  ;;  %v3379_v48 = vpop.xlane.xlu0 %833 }
 0x245   :  { %v1029_v35 = vmul.f32 %v3793_v23, %v988_v27  ;;  %v984_v38 = vrot.slane %v935_v28, %v3191_v7  ;;  %v932_v41 = vrot.slane %v904_v25, %v3257_v30  ;;  %v3790_v43 = vunpack.c.l.bf16 %v3343_v39  ;;  %v3357_v30 = vld [vmem:[%s3773_s2 + $0x38] sm:$0xff]  }
 0x246   :  { %1041 = vadd.xlane.f32.xlu0 %v1021_v15  ;;  %v1022_v42 = vmul.f32 %v3794_v31, %v960_v33  ;;  %v964_v46 = vrot.slane %v885_v34, %v3191_v7  ;;  %v887_v47 = vcombine.high %v883_v24, %v883_v24  ;;  %v3791_v52 = vunpack.c.h.bf16 %v3320_v19 }
 0x247   :  { %v1028_v51 = vmul.f32 %v3795_v37, %v984_v38  ;;  %v992_v53 = vrot.slane %v932_v41, %v3191_v7  ;;  %v934_v54 = vcombine.high %v918_v20, %v918_v20  ;;  %v3788_v56 = vunpack.c.h.bf16 %v3343_v39 }
 0x248   :  { %1051 = vadd.xlane.f32.xlu1 %v1026_v17  ;;  %v1023_v55 = vmul.f32 %v3790_v43, %v964_v46  ;;  %v968_v58 = vrot.slane %v887_v47, %v3191_v7  ;;  %v3789_v61 = vunpack.c.l.bf16 %v3357_v30  ;;  %v936_v4 = vcombine.high %v932_v41, %v932_v41  ;;  %v3381_v20 = vpop.xlane.xlu0 %835 }
 0x249   :  { %v1030_v59 = vmul.f32 %v3791_v52, %v992_v53  ;;  %v996_v63 = vrot.slane %v934_v54, %v3191_v7  ;;  %v3787_v13 = vunpack.c.h.bf16 %v3357_v30  ;;  %v3395_v33 = vsub.s32 4, %v3188_v5 }
 0x24a   :  { %1049 = vadd.xlane.f32.xlu0 %v1025_v49  ;;  %v1024_v10 = vmul.f32 %v3788_v56, %v968_v58  ;;  %v1000_v15 = vrot.slane %v936_v4, %v3191_v7  ;;  %v1070_v49 = vrot.slane %v3379_v48, %v3191_v7  ;;  %v3408_v53 = vsub.s32 3, %v3188_v5 }
 0x24b   :  { %v1031_v11 = vmul.f32 %v3789_v61, %v996_v63  ;;  %v1086_v41 = vrot.slane %v3379_v48, %v3395_v33 }
 0x24c   :  { %1053 = vadd.xlane.f32.xlu1 %v1027_v26  ;;  %v1032_v17 = vmul.f32 %v3787_v13, %v1000_v15  ;;  %v1074_v26 = vrot.slane %v3379_v48, %v3202_v14  ;;  %v1082_v4 = vrot.slane %v3379_v48, %v3408_v53 }
 0x24e   :  { %1039 = vadd.xlane.f32.xlu0 %v1020_v29  ;;  %v1078_v29 = vrot.slane %v3379_v48, %v3207_v45 }
 0x250   :  { %1057 = vadd.xlane.f32.xlu1 %v1029_v35 }
 0x252   :  { %1043 = vadd.xlane.f32.xlu0 %v1022_v42 }
 0x254   :  { %1055 = vadd.xlane.f32.xlu1 %v1028_v51  ;;  %v1102_v51 = vrot.slane %v3381_v20, %v3191_v7 }
 0x256   :  { %1045 = vadd.xlane.f32.xlu0 %v1023_v55  ;;  %v1118_v55 = vrot.slane %v3381_v20, %v3395_v33 }
 0x257   :  { %v3367_v8 = vpop.f32.mrf.mxu0 }
 0x258   :  { %1059 = vadd.xlane.f32.xlu1 %v1030_v59 }
 0x259   :  { %v2706_v9 = vpop.f32.mrf.mxu0 }
 0x25a   :  { %1047 = vadd.xlane.f32.xlu0 %v1024_v10  ;;  %v3420_v9 = vsub.s32 5, %v3188_v5 }
 0x25b   :  { %v3375_v16 = vpop.f32.mrf.mxu0 }
 0x25c   :  { %1061 = vadd.xlane.f32.xlu1 %v1031_v11 }
 0x25d   :  { %v2707_v1 = vpop.f32.mrf.mxu0 }
 0x25e   :  { %v1090_v1 = vrot.slane %v3379_v48, %v3420_v9 }
 0x260   :  { %1063 = vadd.xlane.f32.xlu1 %v1032_v17  ;;  %v3429_v17 = vsub.s32 6, %v3188_v5 }
 0x2c9   :  { %v1034_v22 = vpop.xlane.xlu1 %1033 }
 0x2ca   :  { %v3385_v24 = vadd.f32 %v1070_v49, %v1034_v22  ;;  %v1122_v49 = vrot.slane %v3381_v20, %v3420_v9 }
 0x2cb   :  { %v1038_v25 = vpop.xlane.xlu0 %1037 }
 0x2cc   :  { %1180 = vperm.xlu0 %2741, %v3385_v24   ;;  %v3398_v38 = vadd.f32 %v1078_v29, %v1038_v25  ;;  %v1094_v29 = vrot.slane %v3379_v48, %v3429_v17 }
 0x2cd   :  { %v1036_v27 = vpop.xlane.xlu1 %1035 }
 0x2ce   :  { %v3390_v28 = vadd.f32 %v1074_v26, %v1036_v27 }
 0x2cf   :  { %v1042_v34 = vpop.xlane.xlu0 %1041 }
 0x2d0   :  { %1183 = vperm.xlu1 %2742, %v3390_v28   ;;  %v3403_v47 = vadd.f32 %v1086_v41, %v1042_v34  ;;  %v1126_v34 = vrot.slane %v3381_v20, %v3429_v17 }
 0x2d1   :  { %v1052_v35 = vpop.xlane.xlu1 %1051 }
 0x2d3   :  { %v1050_v42 = vpop.xlane.xlu0 %1049 }
 0x2d4   :  { %1186 = vperm.xlu1 %2742, %v3398_v38   ;;  %v3413_v59 = vadd.f32 %v1102_v51, %v1050_v42  ;;  %v3447_v51 = vsub.s32 7, %v3188_v5 }
 0x2d5   :  { %v1054_v46 = vpop.xlane.xlu1 %1053 }
 0x2d7   :  { %v1040_v54 = vpop.xlane.xlu0 %1039 }
 0x2d8   :  { %1192 = vperm.xlu1 %2742, %v3403_v47   ;;  %v3424_v15 = vadd.f32 %v1082_v4, %v1040_v54 }
 0x2d9   :  { %v1058_v58 = vpop.xlane.xlu1 %1057 }
 0x2da   :  { %v3415_v63 = vadd.f32 %v1118_v55, %v1058_v58  ;;  %v1106_v55 = vrot.slane %v3381_v20, %v3202_v14  ;;  %v1130_v58 = vrot.slane %v3381_v20, %v3447_v51 }
 0x2db   :  { %v1044_v10 = vpop.xlane.xlu0 %1043 }
 0x2dc   :  { %1216 = vperm.xlu0 %2741, %v3415_v63   ;;  %1204 = vperm.xlu1 %2742, %v3413_v59   ;;  %v3434_v25 = vadd.f32 %v1090_v1, %v1044_v10  ;;  %v3457_v10 = vadd.f32 %v1106_v55, %v1052_v35 }
 0x2dd   :  { %v1056_v11 = vpop.xlane.xlu1 %1055 }
 0x2df   :  { %v1046_v27 = vpop.xlane.xlu0 %1045 }
 0x2e0   :  { %1189 = vperm.xlu1 %2742, %v3424_v15   ;;  %v3444_v42 = vadd.f32 %v1094_v29, %v1046_v27  ;;  %v1114_v27 = vrot.slane %v3381_v20, %v3408_v53 }
 0x2e1   :  { %v1060_v22 = vpop.xlane.xlu1 %1059 }
 0x2e2   :  { %v3436_v26 = vadd.f32 %v1122_v49, %v1060_v22  ;;  %v1110_v49 = vrot.slane %v3381_v20, %v3207_v45  ;;  %v3470_v29 = vadd.f32 %v1114_v27, %v1056_v11  ;;  %v1228_v27 = vand.u32 127, %v148_v3 }
 0x2e3   :  { %v1048_v35 = vpop.xlane.xlu0 %1047 }
 0x2e4   :  { %1219 = vperm.xlu0 %2741, %v3436_v26   ;;  %1195 = vperm.xlu1 %2742, %v3434_v25   ;;  %v3465_v22 = vadd.f32 %v1110_v49, %v1054_v46 }
 0x2e5   :  { %v1062_v41 = vpop.xlane.xlu1 %1061 }
 0x2e6   :  { %v3449_v54 = vadd.f32 %v1126_v34, %v1062_v41  ;;  %v1098_v34 = vrot.slane %v3379_v48, %v3447_v51  ;;  %v3480_v48 = vsub.s32 %v1228_v27, %v3188_v5 }
 0x2e8   :  { %1222 = vperm.xlu0 %2741, %v3449_v54   ;;  %1198 = vperm.xlu1 %2742, %v3444_v42   ;;  %v3475_v41 = vadd.f32 %v1098_v34, %v1048_v35 }
 0x2e9   :  { %v1064_v4 = vpop.xlane.xlu1 %1063 }
 0x2ea   :  { %v3459_v1 = vadd.f32 %v1130_v58, %v1064_v4 }
 0x2ec   :  { %1207 = vperm.xlu1 %2742, %v3457_v10   ;;  %1225 = vperm.xlu0 %2741, %v3459_v1  }
 0x2f0   :  { %1210 = vperm.xlu1 %2742, %v3465_v22  }
 0x2f4   :  { %1213 = vperm.xlu1 %2742, %v3470_v29  }
 0x2f8   :  { %1201 = vperm.xlu1 %2742, %v3475_v41  }
 0x347   :  { %v1181_v20 = vpop.permute.xlu0 %1180 }
 0x348   :  { %v1232_v23 = vrot.slane %v1181_v20, %v3480_v48 }
 0x34b   :  { %v1184_v55 = vpop.permute.xlu1 %1183 }
 0x34c   :  { %v1236_v35 = vrot.slane %v1184_v55, %v3480_v48 }
 0x34e   :  { %v1294_v5 = vsel %vm1293_vm1, %v1236_v35, %v1232_v23 }
 0x34f   :  { %v1187_v46 = vpop.permute.xlu1 %1186 }
 0x350   :  { %v1240_v34 = vrot.slane %v1187_v46, %v3480_v48 }
 0x352   :  { %v1296_v55 = vsel %vm1295_vm2, %v1240_v34, %v1294_v5 }
 0x353   :  { %v1193_v58 = vpop.permute.xlu1 %1192 }
 0x354   :  { %v1248_v18 = vrot.slane %v1193_v58, %v3480_v48 }
 0x357   :  { %v1205_v4 = vpop.permute.xlu1 %1204  ;;  %v1217_v56 = vpop.permute.xlu0 %1216 }
 0x358   :  { %v1264_v27 = vrot.slane %v1205_v4, %v3480_v48 }
 0x35b   :  { %v1190_v49 = vpop.permute.xlu1 %1189 }
 0x35c   :  { %v1244_v31 = vrot.slane %v1190_v49, %v3480_v48 }
 0x35e   :  { %v1298_v2 = vsel %vm1297_vm3, %v1244_v31, %v1296_v55 }
 0x35f   :  { %v1196_v13 = vpop.permute.xlu1 %1195  ;;  %v1220_v61 = vpop.permute.xlu0 %1219  ;;  %v1300_v31 = vsel %vm1299_vm4, %v1248_v18, %v1298_v2 }
 0x360   :  { %v1252_v20 = vrot.slane %v1196_v13, %v3480_v48  ;;  %v1284_v34 = vrot.slane %v1220_v61, %v3480_v48 }
 0x363   :  { %v1199_v11 = vpop.permute.xlu1 %1198  ;;  %v1223_v52 = vpop.permute.xlu0 %1222 }
 0x364   :  { %v1256_v23 = vrot.slane %v1199_v11, %v3480_v48 }
 0x367   :  { %v1208_v43 = vpop.permute.xlu1 %1207  ;;  %v1226_v4 = vpop.permute.xlu0 %1225 }
 0x368   :  { %v1268_v37 = vrot.slane %v1208_v43, %v3480_v48  ;;  %v1292_v11 = vrot.slane %v1226_v4, %v3480_v48 }
 0x36a   :  { %v1307_v49 = vsel %vm1293_vm1, %v1268_v37, %v1264_v27  ;;  %v1288_v37 = vrot.slane %v1223_v52, %v3480_v48 }
 0x36b   :  { %v1211_v12 = vpop.permute.xlu1 %1210 }
 0x36c   :  { %v1272_v3 = vrot.slane %v1211_v12, %v3480_v48  ;;  %v1280_v12 = vrot.slane %v1217_v56, %v3480_v48  ;;  %v1302_v56 = vsel %vm1301_vm5, %v1252_v20, %v1300_v31 }
 0x36d   :  { %v1304_v55 = vsel %vm1303_vm6, %v1256_v23, %v1302_v56 }
 0x36e   :  { %v1308_v35 = vsel %vm1295_vm2, %v1272_v3, %v1307_v49 }
 0x36f   :  { %v1214_v46 = vpop.permute.xlu1 %1213 }
 0x370   :  { %v1276_v43 = vrot.slane %v1214_v46, %v3480_v48 }
 0x372   :  { %v1309_v5 = vsel %vm1297_vm3, %v1276_v43, %v1308_v35 }
 0x373   :  { %v1310_v13 = vsel %vm1299_vm4, %v1280_v12, %v1309_v5  ;;  %v1202_v58 = vpop.permute.xlu1 %1201 }
 0x374   :  { %v1260_v3 = vrot.slane %v1202_v58, %v3480_v48  ;;  %v1311_v61 = vsel %vm1301_vm5, %v1284_v34, %v1310_v13 }
 0x375   :  { %v1312_v27 = vsel %vm1303_vm6, %v1288_v37, %v1311_v61 }
 0x376   :  { %v1313_v2 = vsel %vm1305_vm7, %v1292_v11, %v1312_v27  ;;  %v1306_v18 = vsel %vm1305_vm7, %v1260_v3, %v1304_v55 }
 0x377   :  { %v1320_v52 = vsel %vm1316_vm8, %v1313_v2, -inf  ;;  %v1317_v46 = vsel %vm1316_vm8, %v1306_v18, -inf }
 0x378   :  { %1321 = vmax.xlane.f32.xlu0 %v1320_v52  ;;  %1318 = vmax.xlane.f32.xlu1 %v1317_v46 }
 0x401   :  { %v3514_v20 = vpop.xlane.xlu1 %1318  ;;  %v1322_v49 = vpop.xlane.xlu0 %1321 }
 0x402   :  { %v1328_v43 = vrot.slane %v3514_v20, %v3191_v7  ;;  %v1332_v12 = vrot.slane %v3514_v20, %v3202_v14  ;;  %v1364_v23 = vrot.slane %v1322_v49, %v3202_v14  ;;  %v1336_v4 = vrot.slane %v3514_v20, %v3207_v45 }
 0x403   :  { %v1368_v5 = vrot.slane %v1322_v49, %v3207_v45  ;;  %v1340_v37 = vrot.slane %v3514_v20, %v3408_v53  ;;  %v1372_v11 = vrot.slane %v1322_v49, %v3408_v53  ;;  %v1376_v27 = vrot.slane %v1322_v49, %v3395_v33 }
 0x404   :  { %v1405_v35 = vsub.f32 %v3385_v24, %v1328_v43  ;;  %v1406_v34 = vsub.f32 %v3390_v28, %v1332_v12  ;;  %v1414_v31 = vsub.f32 %v3457_v10, %v1364_v23  ;;  %v1407_v13 = vsub.f32 %v3398_v38, %v1336_v4 }
 0x405   :  { %v1415_v3 = vsub.f32 %v3465_v22, %v1368_v5  ;;  %v1344_v24 = vrot.slane %v3514_v20, %v3395_v33  ;;  %v1408_v28 = vsub.f32 %v3424_v15, %v1340_v37  ;;  %v1416_v55 = vsub.f32 %v3470_v29, %v1372_v11 }
 0x406   :  { %v1421_v58 = vmul.f32 1.442695, %v1405_v35  ;;  %v1423_v56 = vmul.f32 1.442695, %v1406_v34  ;;  %v1439_v61 = vmul.f32 1.442695, %v1414_v31  ;;  %v1348_v2 = vrot.slane %v3514_v20, %v3420_v9 }
 0x407   :  { %v1425_v10 = vmul.f32 1.442695, %v1407_v13  ;;  %v1441_v38 = vmul.f32 1.442695, %v1415_v3  ;;  %v1409_v22 = vsub.f32 %v3403_v47, %v1344_v24  ;;  %v1427_v18 = vmul.f32 1.442695, %v1408_v28 }
 0x408   :  { %2861 = vpow2.f32 %v1421_v58  ;;  %v1380_v52 = vrot.slane %v1322_v49, %v3420_v9  ;;  %v1417_v46 = vsub.f32 %v3415_v63, %v1376_v27  ;;  %v1443_v15 = vmul.f32 1.442695, %v1416_v55 }
 0x409   :  { %2863 = vpow2.f32 %v1423_v56  ;;  %v1360_v43 = vrot.slane %v1322_v49, %v3191_v7  ;;  %v1410_v12 = vsub.f32 %v3434_v25, %v1348_v2  ;;  %v1429_v29 = vmul.f32 1.442695, %v1409_v22 }
 0x40a   :  { %2865 = vpow2.f32 %v1439_v61  ;;  %v1384_v23 = vrot.slane %v1322_v49, %v3429_v17  ;;  %v1418_v4 = vsub.f32 %v3436_v26, %v1380_v52  ;;  %v1445_v47 = vmul.f32 1.442695, %v1417_v46 }
 0x40b   :  { %2867 = vpow2.f32 %v1425_v10  ;;  %v1413_v34 = vsub.f32 %v3413_v59, %v1360_v43  ;;  %v1352_v63 = vrot.slane %v3514_v20, %v3429_v17  ;;  %v1431_v5 = vmul.f32 1.442695, %v1410_v12 }
 0x40c   :  { %2869 = vpow2.f32 %v1441_v38  ;;  %v1388_v25 = vrot.slane %v1322_v49, %v3447_v51  ;;  %v1419_v26 = vsub.f32 %v3449_v54, %v1384_v23  ;;  %v1447_v37 = vmul.f32 1.442695, %v1418_v4 }
 0x40d   :  { %2871 = vpow2.f32 %v1427_v18  ;;  %v1437_v59 = vmul.f32 1.442695, %v1413_v34  ;;  %v1356_v58 = vrot.slane %v3514_v20, %v3447_v51  ;;  %v1411_v56 = vsub.f32 %v3444_v42, %v1352_v63 }
 0x40e   :  { %2873 = vpow2.f32 %v1443_v15  ;;  %v1420_v49 = vsub.f32 %v3459_v1, %v1388_v25  ;;  %v1449_v54 = vmul.f32 1.442695, %v1419_v26 }
 0x40f   :  { %2875 = vpow2.f32 %v1429_v29  ;;  %v1412_v61 = vsub.f32 %v3475_v41, %v1356_v58  ;;  %v1433_v24 = vmul.f32 1.442695, %v1411_v56 }
 0x410   :  { %2877 = vpow2.f32 %v1445_v47  ;;  %v1451_v42 = vmul.f32 1.442695, %v1420_v49 }
 0x411   :  { %2879 = vpow2.f32 %v1431_v5  ;;  %v1435_v1 = vmul.f32 1.442695, %v1412_v61 }
 0x412   :  { %2881 = vpow2.f32 %v1447_v37 }
 0x413   :  { %2883 = vpow2.f32 %v1437_v59 }
 0x414   :  { %2885 = vpow2.f32 %v1449_v54 }
 0x415   :  { %v3546_v35 = vpop.eup %2861  ;;  %2887 = vpow2.f32 %v1433_v24 }
 0x416   :  { %v3551_v31 = vpop.eup %2863  ;;  %1470 = vperm.xlu0 %2741, %v3546_v35   ;;  %2889 = vpow2.f32 %v1451_v42 }
 0x417   :  { %1473 = vperm.xlu1 %2742, %v3551_v31   ;;  %v3557_v13 = vpop.eup %2865  ;;  %2891 = vpow2.f32 %v1435_v1 }
 0x418   :  { %v3562_v11 = vpop.eup %2867 }
 0x419   :  { %v3567_v3 = vpop.eup %2869 }
 0x41a   :  { %1497 = vperm.xlu0 %2741, %v3557_v13   ;;  %v3570_v20 = vpop.eup %2871 }
 0x41b   :  { %1476 = vperm.xlu1 %2742, %v3562_v11   ;;  %v3574_v28 = vpop.eup %2873 }
 0x41c   :  { %v3576_v10 = vpop.eup %2875 }
 0x41d   :  { %v3580_v41 = vpop.eup %2877 }
 0x41e   :  { %1500 = vperm.xlu0 %2741, %v3567_v3   ;;  %v3582_v27 = vpop.eup %2879 }
 0x41f   :  { %1479 = vperm.xlu1 %2742, %v3570_v20   ;;  %v3586_v55 = vpop.eup %2881 }
 0x420   :  { %v3588_v38 = vpop.eup %2883 }
 0x421   :  { %v3592_v2 = vpop.eup %2885 }
 0x422   :  { %1503 = vperm.xlu0 %2741, %v3574_v28   ;;  %v3594_v22 = vpop.eup %2887 }
 0x423   :  { %1482 = vperm.xlu1 %2742, %v3576_v10   ;;  %v3598_v18 = vpop.eup %2889 }
 0x424   :  { %v3600_v52 = vpop.eup %2891 }
 0x426   :  { %1506 = vperm.xlu0 %2741, %v3580_v41  }
 0x427   :  { %1485 = vperm.xlu1 %2742, %v3582_v27  }
 0x42a   :  { %1509 = vperm.xlu0 %2741, %v3586_v55  }
 0x42b   :  { %1494 = vperm.xlu1 %2742, %v3588_v38  }
 0x42e   :  { %1512 = vperm.xlu0 %2741, %v3592_v2  }
 0x42f   :  { %1488 = vperm.xlu1 %2742, %v3594_v22  }
 0x432   :  { %1515 = vperm.xlu0 %2741, %v3598_v18  }
 0x433   :  { %1491 = vperm.xlu1 %2742, %v3600_v52  }
 0x491   :  { %v1471_v46 = vpop.permute.xlu0 %1470 }
 0x492   :  { %v1474_v15 = vpop.permute.xlu1 %1473  ;;  %v1520_v26 = vrot.slane %v1471_v46, %v3480_v48 }
 0x493   :  { %v1524_v25 = vrot.slane %v1474_v15, %v3480_v48 }
 0x495   :  { %v1498_v43 = vpop.permute.xlu0 %1497  ;;  %v1581_v1 = vsel %vm1293_vm1, %v1524_v25, %v1520_v26 }
 0x496   :  { %v1477_v12 = vpop.permute.xlu1 %1476  ;;  %v1556_v59 = vrot.slane %v1498_v43, %v3480_v48 }
 0x497   :  { %v1528_v56 = vrot.slane %v1477_v12, %v3480_v48 }
 0x499   :  { %v1501_v29 = vpop.permute.xlu0 %1500 }
 0x49a   :  { %v1480_v23 = vpop.permute.xlu1 %1479  ;;  %v1560_v49 = vrot.slane %v1501_v29, %v3480_v48 }
 0x49b   :  { %v1532_v54 = vrot.slane %v1480_v23, %v3480_v48 }
 0x49d   :  { %v1504_v4 = vpop.permute.xlu0 %1503 }
 0x49e   :  { %v1483_v47 = vpop.permute.xlu1 %1482  ;;  %v1564_v61 = vrot.slane %v1504_v4, %v3480_v48 }
 0x49f   :  { %v1536_v46 = vrot.slane %v1483_v47, %v3480_v48 }
 0x4a1   :  { %v1507_v34 = vpop.permute.xlu0 %1506 }
 0x4a2   :  { %v1486_v63 = vpop.permute.xlu1 %1485  ;;  %v1568_v15 = vrot.slane %v1507_v34, %v3480_v48 }
 0x4a3   :  { %v1540_v12 = vrot.slane %v1486_v63, %v3480_v48 }
 0x4a5   :  { %v1510_v5 = vpop.permute.xlu0 %1509 }
 0x4a6   :  { %v1495_v37 = vpop.permute.xlu1 %1494  ;;  %v1572_v23 = vrot.slane %v1510_v5, %v3480_v48 }
 0x4a7   :  { %v1552_v58 = vrot.slane %v1495_v37, %v3480_v48 }
 0x4a9   :  { %v1588_v24 = vsel %vm1293_vm1, %v1556_v59, %v1552_v58  ;;  %v1513_v42 = vpop.permute.xlu0 %1512  ;;  %v1582_v59 = vsel %vm1295_vm2, %v1528_v56, %v1581_v1 }
 0x4aa   :  { %v1589_v43 = vsel %vm1295_vm2, %v1560_v49, %v1588_v24  ;;  %v1489_v37 = vpop.permute.xlu1 %1488  ;;  %v1576_v4 = vrot.slane %v1513_v42, %v3480_v48  ;;  %v1583_v47 = vsel %vm1297_vm3, %v1532_v54, %v1582_v59 }
 0x4ab   :  { %v1590_v29 = vsel %vm1297_vm3, %v1564_v61, %v1589_v43  ;;  %v1544_v25 = vrot.slane %v1489_v37, %v3480_v48  ;;  %v1584_v49 = vsel %vm1299_vm4, %v1536_v46, %v1583_v47 }
 0x4ac   :  { %v1591_v58 = vsel %vm1299_vm4, %v1568_v15, %v1590_v29  ;;  %v1585_v5 = vsel %vm1301_vm5, %v1540_v12, %v1584_v49 }
 0x4ad   :  { %v1592_v34 = vsel %vm1301_vm5, %v1572_v23, %v1591_v58  ;;  %v1516_v26 = vpop.permute.xlu0 %1515  ;;  %v1586_v42 = vsel %vm1303_vm6, %v1544_v25, %v1585_v5 }
 0x4ae   :  { %v1492_v63 = vpop.permute.xlu1 %1491  ;;  %v1580_v61 = vrot.slane %v1516_v26, %v3480_v48  ;;  %v1593_v56 = vsel %vm1303_vm6, %v1576_v4, %v1592_v34 }
 0x4af   :  { %v1548_v24 = vrot.slane %v1492_v63, %v3480_v48 }
 0x4b0   :  { %v1594_v1 = vsel %vm1305_vm7, %v1580_v61, %v1593_v56  ;;  %v2824_v56 = vld [vmem:[#allocation10 + $0x38] sm:$0xff]  }
 0x4b1   :  { %v1587_v54 = vsel %vm1305_vm7, %v1548_v24, %v1586_v42  ;;  %v1600_v15 = vsel %vm1316_vm8, %v1594_v1, 0.0  ;;  %2669 = vmatpush3.bf16.msra.mxu1 %v2824_v56  ;;  %v2826_v42 = vld [vmem:[#allocation10 + $0x28] sm:$0xff]  }
 0x4b2   :  { %v1597_v43 = vsel %vm1316_vm8, %v1587_v54, 0.0  ;;  %1601 = vadd.xlane.f32.xlu0 %v1600_v15  ;;  %2670 = vmatprep.subr.bf16.mxu1 %v3011_v0 }
 0x4b3   :  { %1598 = vadd.xlane.f32.xlu1 %v1597_v43 }
 0x53b   :  { %v1602_v46 = vpop.xlane.xlu0 %1601 }
 0x53c   :  { %v1599_v37 = vpop.xlane.xlu1 %1598  ;;  %2893 = vrcp.f32 %v1602_v46 }
 0x53d   :  { %2895 = vrcp.f32 %v1599_v37 }
 0x549   :  { %v2894_v12 = vpop.eup %2893 }
 0x54a   :  { %v2896_v48 = vpop.eup %2895  ;;  %v1646_v25 = vrot.slane %v2894_v12, %v3202_v14  ;;  %v1650_v49 = vrot.slane %v2894_v12, %v3207_v45  ;;  %v1662_v5 = vrot.slane %v2894_v12, %v3420_v9  ;;  %v1666_v24 = vrot.slane %v2894_v12, %v3429_v17 }
 0x54b   :  { %v1614_v29 = vrot.slane %v2896_v48, %v3202_v14  ;;  %v1610_v23 = vrot.slane %v2896_v48, %v3191_v7  ;;  %v1618_v58 = vrot.slane %v2896_v48, %v3207_v45  ;;  %v1622_v26 = vrot.slane %v2896_v48, %v3408_v53 }
 0x54c   :  { %v1696_v34 = vmul.f32 %v3557_v13, %v1646_v25  ;;  %v1626_v63 = vrot.slane %v2896_v48, %v3395_v33  ;;  %v1654_v14 = vrot.slane %v2894_v12, %v3408_v53  ;;  %v1630_v61 = vrot.slane %v2896_v48, %v3420_v9 }
 0x54d   :  { %v1688_v4 = vmul.f32 %v3551_v31, %v1614_v29  ;;  %v1687_v59 = vmul.f32 %v3546_v35, %v1610_v23  ;;  %v1689_v47 = vmul.f32 %v3562_v11, %v1618_v58  ;;  %v1690_v31 = vmul.f32 %v3570_v20, %v1622_v26 }
 0x54e   :  { %v1697_v35 = vmul.f32 %v3567_v3, %v1650_v49  ;;  %v1691_v11 = vmul.f32 %v3576_v10, %v1626_v63  ;;  %v1698_v13 = vmul.f32 %v3574_v28, %v1654_v14  ;;  %v1658_v45 = vrot.slane %v2894_v12, %v3395_v33 }
 0x54f   :  { %1710 = vperm.xlu1 %2742, %v1688_v4   ;;  %1705 = vperm.xlu0 %2741, %v1687_v59   ;;  %v1692_v20 = vmul.f32 %v3582_v27, %v1630_v61  ;;  %v1642_v53 = vrot.slane %v2894_v12, %v3191_v7  ;;  %v1700_v10 = vmul.f32 %v3586_v55, %v1662_v5  ;;  %v2825_v55 = vld [vmem:[#allocation10 + $0x30] sm:$0xff]   ;;  %v3798_v63 = vunpack.c.l.bf16 %v3307_v62 }
 0x550   :  { %v1699_v3 = vmul.f32 %v3580_v41, %v1658_v45  ;;  %v1634_v33 = vrot.slane %v2896_v48, %v3429_v17  ;;  %v1701_v41 = vmul.f32 %v3592_v2, %v1666_v24  ;;  %v1670_v7 = vrot.slane %v2894_v12, %v3447_v51  ;;  %2671 = vmatpush3.bf16.msra.mxu1 %v2825_v55  ;;  %v2827_v2 = vld [vmem:[#allocation10 + $0x20] sm:$0xff]  }
 0x551   :  { %v1695_v28 = vmul.f32 %v3588_v38, %v1642_v53  ;;  %v1638_v27 = vrot.slane %v2896_v48, %v3447_v51  ;;  %2672 = vmatprep.subr.bf16.mxu1 %v3011_v0  ;;  %v2828_v51 = vld [vmem:[#allocation10 + $0x18] sm:$0xff]  }
 0x552   :  { %v1693_v9 = vmul.f32 %v3594_v22, %v1634_v33  ;;  %v1702_v17 = vmul.f32 %v3598_v18, %v1670_v7  ;;  %v2829_v22 = vld [vmem:[#allocation10 + $0x10] sm:$0xff]   ;;  %v2830_v18 = vld [vmem:[#allocation10 + $0x8] sm:$0xff]  }
 0x553   :  { %1715 = vperm.xlu1 %2742, %v1689_v47   ;;  %1750 = vperm.xlu0 %2741, %v1696_v34   ;;  %v1694_v38 = vmul.f32 %v3600_v52, %v1638_v27  ;;  %v2831_v52 = vld [vmem:[#allocation10] sm:$0xff]  }
 0x554   :  { %2673 = vmatpush3.bf16.msra.mxu1 %v2826_v42 }
 0x555   :  { %2674 = vmatprep.subr.bf16.mxu1 %v3011_v0 }
 0x557   :  { %1720 = vperm.xlu1 %2742, %v1690_v31   ;;  %1755 = vperm.xlu0 %2741, %v1697_v35  }
 0x558   :  { %2675 = vmatpush3.bf16.msra.mxu1 %v2827_v2 }
 0x559   :  { %2676 = vmatprep.subr.bf16.mxu1 %v3011_v0 }
 0x55b   :  { %1725 = vperm.xlu1 %2742, %v1691_v11   ;;  %1760 = vperm.xlu0 %2741, %v1698_v13  }
 0x55c   :  { %2677 = vmatpush3.bf16.msra.mxu1 %v2828_v51 }
 0x55d   :  { %2678 = vmatprep.subr.bf16.mxu1 %v3011_v0 }
 0x55f   :  { %1730 = vperm.xlu1 %2742, %v1692_v20   ;;  %1765 = vperm.xlu0 %2741, %v1699_v3  }
 0x560   :  { %2679 = vmatpush3.bf16.msra.mxu1 %v2829_v22 }
 0x561   :  { %2680 = vmatprep.subr.bf16.mxu1 %v3011_v0 }
 0x563   :  { %1770 = vperm.xlu0 %2741, %v1700_v10   ;;  %1745 = vperm.xlu1 %2742, %v1695_v28   ;;  %v3799_v28 = vunpack.c.l.bf16 %v3285_v57 }
 0x564   :  { %2681 = vmatpush3.bf16.msra.mxu1 %v2830_v18  ;;  %v3801_v18 = vunpack.c.h.bf16 %v3285_v57 }
 0x565   :  { %2682 = vmatprep.subr.bf16.mxu1 %v3011_v0 }
 0x567   :  { %1775 = vperm.xlu0 %2741, %v1701_v41   ;;  %1735 = vperm.xlu1 %2742, %v1693_v9  }
 0x568   :  { %2683 = vmatpush3.bf16.msra.mxu1 %v2831_v52 }
 0x569   :  { %2708 = vmatprep.subr.bf16.mxu1 %v3011_v0 }
 0x56b   :  { %1780 = vperm.xlu0 %2741, %v1702_v17   ;;  %1740 = vperm.xlu1 %2742, %v1694_v38  }
 0x5ca   :  { %v1711_v1 = vpop.permute.xlu1 %1710  ;;  %v1706_v54 = vpop.permute.xlu0 %1705 }
 0x5cb   :  { %v1784_v15 = vmul.f32 %v2513_v50, %v1711_v1  ;;  %v1783_v43 = vmul.f32 %v2512_v40, %v1706_v54 }
 0x5cd   :  { %v1805_v46 = vrot.slane %v1784_v15, 4  ;;  %v1799_v37 = vrot.slane %v1783_v43, 4 }
 0x5ce   :  { %v1716_v12 = vpop.permute.xlu1 %1715  ;;  %v1751_v48 = vpop.permute.xlu0 %1750 }
 0x5cf   :  { %v1806_v29 = vadd.f32 %v1805_v46, %v1784_v15  ;;  %v1800_v23 = vadd.f32 %v1799_v37, %v1783_v43  ;;  %v1785_v4 = vmul.f32 %v2516_v44, %v1716_v12  ;;  %v1792_v59 = vmul.f32 %v2529_v6, %v1751_v48 }
 0x5d0   :  { %v3802_v37 = vunpack.c.l.bf16 %v3320_v19 }
 0x5d1   :  { %v1807_v58 = vrot.slane %v1806_v29, 2  ;;  %v1801_v25 = vrot.slane %v1800_v23, 2  ;;  %v1811_v47 = vrot.slane %v1785_v4, 4  ;;  %v1853_v34 = vrot.slane %v1792_v59, 4 }
 0x5d2   :  { %v1721_v50 = vpop.permute.xlu1 %1720  ;;  %v1756_v26 = vpop.permute.xlu0 %1755 }
 0x5d3   :  { %v1808_v32 = vadd.f32 %v1807_v58, %v1806_v29  ;;  %v1802_v40 = vadd.f32 %v1801_v25, %v1800_v23  ;;  %v1812_v49 = vadd.f32 %v1811_v47, %v1785_v4  ;;  %v1854_v31 = vadd.f32 %v1853_v34, %v1792_v59 }
 0x5d4   :  { %v1786_v35 = vmul.f32 %v2517_v21, %v1721_v50  ;;  %v1793_v14 = vmul.f32 %v3798_v63, %v1756_v26  ;;  %v3803_v47 = vunpack.c.l.bf16 %v3292_v60 }
 0x5d5   :  { %v1813_v44 = vrot.slane %v1812_v49, 2  ;;  %v1855_v11 = vrot.slane %v1854_v31, 2  ;;  %v1809_v20 = vrot.slane %v1808_v32, 1  ;;  %v1803_v3 = vrot.slane %v1802_v40, 1 }
 0x5d6   :  { %v1817_v13 = vrot.slane %v1786_v35, 4  ;;  %v1859_v6 = vrot.slane %v1793_v14, 4  ;;  %v1726_v61 = vpop.permute.xlu1 %1725  ;;  %v1761_v45 = vpop.permute.xlu0 %1760 }
 0x5d7   :  { %v1856_v5 = vadd.f32 %v1855_v11, %v1854_v31  ;;  %v1787_v24 = vmul.f32 %v3799_v28, %v1726_v61  ;;  %v1794_v21 = vmul.f32 %v3800_v36, %v1761_v45  ;;  %v1814_v33 = vadd.f32 %v1813_v44, %v1812_v49 }
 0x5d8   :  { %v1818_v53 = vadd.f32 %v1817_v13, %v1786_v35  ;;  %v1860_v10 = vadd.f32 %v1859_v6, %v1793_v14  ;;  %v1810_v17 = vadd.f32 %v1809_v20, %v1808_v32  ;;  %v1804_v38 = vadd.f32 %v1803_v3, %v1802_v40 }
 0x5d9   :  { %v1823_v9 = vrot.slane %v1787_v24, 4  ;;  %v1865_v7 = vrot.slane %v1794_v21, 4  ;;  %v1857_v42 = vrot.slane %v1856_v5, 1  ;;  %v1815_v1 = vrot.slane %v1814_v33, 1 }
 0x5da   :  { %v1819_v56 = vrot.slane %v1818_v53, 2  ;;  %v1861_v41 = vrot.slane %v1860_v10, 2  ;;  %v1731_v27 = vpop.permute.xlu1 %1730  ;;  %v1766_v55 = vpop.permute.xlu0 %1765  ;;  %v1912_v48 = vpack.c.bf16 %v1810_v17, %v1810_v17  ;;  %v1911_v29 = vpack.c.bf16 %v1804_v38, %v1804_v38 }
 0x5db   :  { %v1866_v51 = vadd.f32 %v1865_v7, %v1794_v21  ;;  %v1824_v22 = vadd.f32 %v1823_v9, %v1787_v24  ;;  %v1788_v52 = vmul.f32 %v3801_v18, %v1731_v27  ;;  %v1795_v12 = vmul.f32 %v3802_v37, %v1766_v55 }
 0x5dc   :  { %v1820_v2 = vadd.f32 %v1819_v56, %v1818_v53  ;;  %v1862_v54 = vadd.f32 %v1861_v41, %v1860_v10  ;;  %v1858_v23 = vadd.f32 %v1857_v42, %v1856_v5  ;;  %v3698_v34 = vadd.f32 %v1815_v1, %v1814_v33 }
 0x5dd   :  { %v1867_v62 = vrot.slane %v1866_v51, 2  ;;  %v1829_v46 = vrot.slane %v1788_v52, 4  ;;  %v1825_v59 = vrot.slane %v1824_v22, 2  ;;  %v1871_v25 = vrot.slane %v1795_v12, 4 }
 0x5de   :  { %v1746_v15 = vpop.permute.xlu1 %1745  ;;  %v1771_v43 = vpop.permute.xlu0 %1770  ;;  %v1821_v4 = vrot.slane %v1820_v2, 1  ;;  %v1863_v50 = vrot.slane %v1862_v54, 1  ;;  %v3804_v35 = vunpack.c.h.bf16 %v3320_v19  ;;  %v3702_v44 = vunpack.c.l.b16 %v1912_v48 }
 0x5df   :  { %v1830_v58 = vadd.f32 %v1829_v46, %v1788_v52  ;;  %v1791_v57 = vmul.f32 %v3803_v47, %v1746_v15  ;;  %v1868_v26 = vadd.f32 %v1867_v62, %v1866_v51  ;;  %v1872_v49 = vadd.f32 %v1871_v25, %v1795_v12 }
 0x5e0   :  { %v1796_v63 = vmul.f32 %v3804_v35, %v1771_v43  ;;  %v3704_v11 = vunpack.c.l.b16 %v1911_v29  ;;  %v1920_v13 = vpack.c.bf16 %v1858_v23, %v1858_v23  ;;  %v3706_v6 = vadd.f32 %v1821_v4, %v1820_v2 }
 0x5e1   :  { %v1831_v40 = vrot.slane %v1830_v58, 2  ;;  %v1847_v31 = vrot.slane %v1791_v57, 4  ;;  %v1826_v60 = vadd.f32 %v1825_v59, %v1824_v22  ;;  %v1873_v61 = vrot.slane %v1872_v49, 2 }
 0x5e2   :  { %v1736_v32 = vpop.permute.xlu1 %1735  ;;  %v1776_v14 = vpop.permute.xlu0 %1775  ;;  %v1877_v20 = vrot.slane %v1796_v63, 4  ;;  %v1913_v3 = vpack.c.bf16 %v3698_v34, %v3698_v34  ;;  %v1864_v5 = vadd.f32 %v1863_v50, %v1862_v54  ;;  %v1869_v53 = vrot.slane %v1868_v26, 1 }
 0x5e3   :  { %v1848_v45 = vadd.f32 %v1847_v31, %v1791_v57  ;;  %v3805_v19 = vunpack.c.l.bf16 %v3343_v39  ;;  %v1832_v28 = vadd.f32 %v1831_v40, %v1830_v58  ;;  %v1874_v24 = vadd.f32 %v1873_v61, %v1872_v49 }
 0x5e4   :  { %v1878_v21 = vadd.f32 %v1877_v20, %v1796_v63  ;;  %v1968_v56 = vunpack.c.l.b16 %v1920_v13  ;;  %v1914_v41 = vpack.c.bf16 %v3706_v6, %v3706_v6  ;;  %v3806_v7 = vunpack.c.l.bf16 %v3357_v30 }
 0x5e5   :  { %v1789_v10 = vmul.f32 %v3805_v19, %v1736_v32  ;;  %v1849_v36 = vrot.slane %v1848_v45, 2  ;;  %v1827_v55 = vrot.slane %v1826_v60, 1  ;;  %v1875_v17 = vrot.slane %v1874_v24, 1 }
 0x5e6   :  { %v1741_v33 = vpop.permute.xlu1 %1740  ;;  %v1797_v27 = vmul.f32 %v3806_v7, %v1776_v14  ;;  %v1879_v42 = vrot.slane %v1878_v21, 2  ;;  %v1781_v2 = vpop.permute.xlu0 %1780  ;;  %v1921_v51 = vpack.c.bf16 %v1864_v5, %v1864_v5  ;;  %v3807_v52 = vunpack.c.h.bf16 %v3343_v39 }
 0x5e7   :  { %v1835_v9 = vrot.slane %v1789_v10, 4  ;;  %v1850_v38 = vadd.f32 %v1849_v36, %v1848_v45  ;;  %v1870_v54 = vadd.f32 %v1869_v53, %v1868_v26  ;;  %v1833_v62 = vrot.slane %v1832_v28, 1 }
 0x5e8   :  { %v1883_v18 = vrot.slane %v1797_v27, 4  ;;  %v1790_v1 = vmul.f32 %v3807_v52, %v1741_v33  ;;  %v1880_v43 = vadd.f32 %v1879_v42, %v1878_v21  ;;  %v3808_v48 = vunpack.c.h.bf16 %v3357_v30 }
 0x5e9   :  { %v1836_v22 = vadd.f32 %v1835_v9, %v1789_v10  ;;  %v1851_v15 = vrot.slane %v1850_v38, 1  ;;  %v1828_v23 = vadd.f32 %v1827_v55, %v1826_v60  ;;  %v1876_v4 = vadd.f32 %v1875_v17, %v1874_v24 }
 0x5ea   :  { %v1884_v37 = vadd.f32 %v1883_v18, %v1797_v27  ;;  %v1841_v12 = vrot.slane %v1790_v1, 4  ;;  %v1798_v29 = vmul.f32 %v3808_v48, %v1781_v2  ;;  %v1881_v58 = vrot.slane %v1880_v43, 1 }
 0x5eb   :  { %v1837_v46 = vrot.slane %v1836_v22, 2  ;;  %v1852_v59 = vadd.f32 %v1851_v15, %v1850_v38  ;;  %v1969_v39 = vunpack.c.l.b16 %v1921_v51  ;;  %v1922_v50 = vpack.c.bf16 %v1870_v54, %v1870_v54 }
 0x5ec   :  { %v1885_v47 = vrot.slane %v1884_v37, 2  ;;  %v1842_v57 = vadd.f32 %v1841_v12, %v1790_v1  ;;  %v1889_v34 = vrot.slane %v1798_v29, 4  ;;  %v1834_v26 = vadd.f32 %v1833_v62, %v1832_v28 }
 0x5ed   :  { %v1838_v25 = vadd.f32 %v1837_v46, %v1836_v22  ;;  %v1919_v32 = vpack.c.bf16 %v1852_v59, %v1852_v59  ;;  %v1915_v63 = vpack.c.bf16 %v1828_v23, %v1828_v23  ;;  %v1923_v14 = vpack.c.bf16 %v1876_v4, %v1876_v4  ;;  %v2832_v4 = vld [vmem:[#allocation11 + $0x38] sm:$0xff]   ;;  %v2833_v59 = vld [vmem:[#allocation11 + $0x30] sm:$0xff]  }
 0x5ee   :  { %v1886_v49 = vadd.f32 %v1885_v47, %v1884_v37  ;;  %v1843_v31 = vrot.slane %v1842_v57, 2  ;;  %v1890_v35 = vadd.f32 %v1889_v34, %v1798_v29  ;;  %v1882_v13 = vadd.f32 %v1881_v58, %v1880_v43  ;;  %v2834_v58 = vld [vmem:[#allocation11 + $0x28] sm:$0xff]   ;;  %v2836_v47 = vld [vmem:[#allocation11 + $0x18] sm:$0xff]  }
 0x5ef   :  { %v1839_v40 = vrot.slane %v1838_v25, 1  ;;  %v1967_v30 = vunpack.c.l.b16 %v1919_v32  ;;  %v1961_v20 = vunpack.c.l.b16 %v1913_v3  ;;  %v1970_v5 = vunpack.c.l.b16 %v1922_v50  ;;  %v2838_v34 = vld [vmem:[#allocation11 + $0x8] sm:$0xff]  }
 0x5f0   :  { %v1887_v60 = vrot.slane %v1886_v49, 1  ;;  %v1844_v61 = vadd.f32 %v1843_v31, %v1842_v57  ;;  %v1891_v45 = vrot.slane %v1890_v35, 2  ;;  %v1916_v53 = vpack.c.bf16 %v1834_v26, %v1834_v26  ;;  %v2837_v57 = vld [vmem:[#allocation11 + $0x10] sm:$0xff]   ;;  %v2495_v32 = vld [vmem:[%s3782_s11] ss:$0 sm:$0xff] }
 0x5f1   :  { %v1840_v6 = vadd.f32 %v1839_v40, %v1838_v25  ;;  %v1982_v19 = vsel %vm1293_vm1, %v1968_v56, %v1967_v30  ;;  %v1962_v21 = vunpack.c.l.b16 %v1914_v41  ;;  %v1924_v9 = vpack.c.bf16 %v1882_v13, %v1882_v13  ;;  %v2835_v25 = vld [vmem:[#allocation11 + $0x20] sm:$0xff]  }
 0x5f2   :  { %v1983_v10 = vsel %vm1295_vm2, %v1969_v39, %v1982_v19  ;;  %v1888_v24 = vadd.f32 %v1887_v60, %v1886_v49  ;;  %v1845_v36 = vrot.slane %v1844_v61, 1  ;;  %v1892_v7 = vadd.f32 %v1891_v45, %v1890_v35  ;;  %v2839_v39 = vld [vmem:[#allocation11] sm:$0xff]  }
 0x5f3   :  { %v1917_v28 = vpack.c.bf16 %v1840_v6, %v1840_v6  ;;  %v1984_v33 = vsel %vm1297_vm3, %v1970_v5, %v1983_v10  ;;  %v1963_v27 = vunpack.c.l.b16 %v1915_v63  ;;  %v1971_v55 = vunpack.c.l.b16 %v1923_v14 }
 0x5f4   :  { %v1925_v17 = vpack.c.bf16 %v1888_v24, %v1888_v24  ;;  %v1846_v38 = vadd.f32 %v1845_v36, %v1844_v61  ;;  %v1975_v3 = vsel %vm1293_vm1, %v3702_v44, %v3704_v11  ;;  %v1964_v42 = vunpack.c.l.b16 %v1916_v53 }
 0x5f5   :  { %v1893_v56 = vrot.slane %v1892_v7, 1  ;;  %v1976_v2 = vsel %vm1295_vm2, %v1961_v20, %v1975_v3  ;;  %v1985_v51 = vsel %vm1299_vm4, %v1971_v55, %v1984_v33  ;;  %v1965_v22 = vunpack.c.l.b16 %v1917_v28 }
 0x5f6   :  { %v1918_v41 = vpack.c.bf16 %v1846_v38, %v1846_v38  ;;  %v1977_v18 = vsel %vm1297_vm3, %v1962_v21, %v1976_v2  ;;  %v1972_v52 = vunpack.c.l.b16 %v1924_v9  ;;  %v1973_v62 = vunpack.c.l.b16 %v1925_v17 }
 0x5f7   :  { %v1894_v1 = vadd.f32 %v1893_v56, %v1892_v7  ;;  %v1978_v54 = vsel %vm1299_vm4, %v1963_v27, %v1977_v18 }
 0x5f8   :  { %v1966_v15 = vunpack.c.l.b16 %v1918_v41  ;;  %v1979_v43 = vsel %vm1301_vm5, %v1964_v42, %v1978_v54  ;;  %v1986_v44 = vsel %vm1301_vm5, %v1972_v52, %v1985_v51  ;;  %v2345_v41 = vld [vmem:[#allocation4] sm:$0xff] }
 0x5f9   :  { %v1926_v11 = vpack.c.bf16 %v1894_v1, %v1894_v1  ;;  %v1980_v46 = vsel %vm1303_vm6, %v1965_v22, %v1979_v43  ;;  %v1987_v48 = vsel %vm1303_vm6, %v1973_v62, %v1986_v44 }
 0x5fa   :  { %v1981_v12 = vsel %vm1305_vm7, %v1966_v15, %v1980_v46  ;;  %v2346_v15 = vld [vmem:[#allocation4 + $0x8] sm:$0xff] }
 0x5fb   :  { %v1974_v37 = vunpack.c.l.b16 %v1926_v11 }
 0x5fd   :  { %v1988_v29 = vsel %vm1305_vm7, %v1974_v37, %v1987_v48 }
 0x5fe   :  { %v1989_v23 = vpack.c.b16 %v1988_v29, %v1981_v12 }
 0x600   :  { %2685 = vmatmul.mubr.bf16.vlgmr.msra.gmra.mxu1 %v1989_v23 }
 0x601   :  { %2724 = vmatprep.mubr.msk.bf16.mxu1 %vm3013_vm0, %v3011_v0  ;;  %2709 = vmatpush3.bf16.msra.mxu1 %v2832_v4 }
 0x602   :  { %2710 = vmatprep.subr.bf16.mxu1 %v3011_v0 }
 0x605   :  { %2711 = vmatpush3.bf16.msra.mxu1 %v2833_v59 }
 0x606   :  { %2712 = vmatprep.subr.bf16.mxu1 %v3011_v0 }
 0x609   :  { %2713 = vmatpush3.bf16.msra.mxu1 %v2834_v58 }
 0x60a   :  { %2714 = vmatprep.subr.bf16.mxu1 %v3011_v0 }
 0x60d   :  { %2715 = vmatpush3.bf16.msra.mxu1 %v2835_v25 }
 0x60e   :  { %2716 = vmatprep.subr.bf16.mxu1 %v3011_v0 }
 0x611   :  { %2717 = vmatpush3.bf16.msra.mxu1 %v2836_v47 }
 0x612   :  { %2718 = vmatprep.subr.bf16.mxu1 %v3011_v0 }
 0x615   :  { %2719 = vmatpush3.bf16.msra.mxu1 %v2837_v57 }
 0x616   :  { %2720 = vmatprep.subr.bf16.mxu1 %v3011_v0 }
 0x619   :  { %2721 = vmatpush3.bf16.msra.mxu1 %v2838_v34 }
 0x61a   :  { %2722 = vmatprep.subr.bf16.mxu1 %v3011_v0 }
 0x61d   :  { %2723 = vmatpush3.bf16.msra.mxu1 %v2839_v39 }
 0x6c0   :  { %v2073_v50 = vpop.f32.mrf.mxu1 }
 0x6c1   :  { %v2163_v26 = vadd.f32 %v3367_v8, %v2073_v50  ;;  %v3015_v8 = vmov -1e+30  }
 0x6c2   :  { %v2686_v40 = vpop.f32.mrf.mxu1  ;;  %2191 = vst.msk [vmem:[#allocation3] sm:$0xff] %vm2190_vm9, %v3015_v8  ;;  %2192 = vst.msk [vmem:[#allocation3 + $0x8] sm:$0xff] %vm2190_vm9, %v3015_v8 }
 0x6c3   :  { %v2176_v49 = vadd.f32 %v2495_v32, %v2163_v26 }
 0x6c4   :  { %v2076_v31 = vpop.f32.mrf.mxu1 }
 0x6c5   :  { %v2166_v35 = vadd.f32 %v3375_v16, %v2076_v31  ;;  %2897 = vtanh.f32 %v2176_v49  ;;  %v2498_v16 = vld [vmem:[%s3784_s13] ss:$0 sm:$0xff] }
 0x6c6   :  { %v2687_v63 = vpop.f32.mrf.mxu1 }
 0x6c7   :  { %v2177_v14 = vadd.f32 %v2495_v32, %v2166_v35 }
 0x6c9   :  { %2899 = vtanh.f32 %v2177_v14  ;;  %v2315_v10 = vld [vmem:[#allocation3] sm:$0xff]  ;;  %v2316_v36 = vld [vmem:[#allocation3 + $0x8] sm:$0xff] }
 0x6d2   :  { %v2898_v30 = vpop.eup %2897 }
 0x6d6   :  { %v2900_v13 = vpop.eup %2899 }
 0x6d7   :  { %v2545_v6 = vpack.c.bf16 %v2900_v13, %v2898_v30 }
 0x6d9   :  { %2546 = vst [vmem:[#allocation2] sm:$0xff] %v2545_v6  }
 0x6e0   :  { %v2840_v60 = vld [vmem:[#allocation2] sm:$0xff]  }
 0x6e1   :  { %2725 = vmatmul.mubr.bf16.vlgmr.msra.gmra.mxu1 %v2840_v60 }
 0x7a1   :  { %v2308_v61 = vpop.f32.mrf.mxu1 }
 0x7a2   :  { %v2309_v45 = vadd.f32 %v2498_v16, %v2308_v61 }
 0x7a3   :  { %v2726_v20 = vpop.f32.mrf.mxu1 }
 0x7a4   :  { %2317 = vmax.xlane.f32.xlu1 %v2309_v45 }
 0x7a5   :  { %v2311_v5 = vpop.f32.mrf.mxu1 }
 0x7a6   :  { %v2312_v53 = vadd.f32 %v2498_v16, %v2311_v5 }
 0x7a7   :  { %v2727_v19 = vpop.f32.mrf.mxu1 }
 0x7a8   :  { %2319 = vmax.xlane.f32.xlu0 %v2312_v53 }
 0x82d   :  { %v2318_v28 = vpop.xlane.xlu1 %2317 }
 0x82e   :  { %v2321_v24 = vmax.f32 %v2315_v10, %v2318_v28 }
 0x830   :  { %v2347_v21 = vsub.f32 %v2315_v10, %v2321_v24  ;;  %2364 = vst.msk [vmem:[#allocation3] sm:$0xff] %vm2190_vm9, %v2321_v24  ;;  %2368 = vst.msk [vmem:[#allocation5] sm:$0xff] %vm2190_vm9, %v2321_v24  ;;  %2325 = vperm.xlu0 %2741, %v2321_v24  }
 0x831   :  { %v2320_v0 = vpop.xlane.xlu0 %2319 }
 0x832   :  { %v2322_v33 = vmax.f32 %v2316_v36, %v2320_v0  ;;  %v2349_v2 = vmul.f32 1.442695, %v2347_v21 }
 0x834   :  { %v2348_v9 = vsub.f32 %v2316_v36, %v2322_v33  ;;  %2365 = vst.msk [vmem:[#allocation3 + $0x8] sm:$0xff] %vm2190_vm9, %v2322_v33  ;;  %2369 = vst.msk [vmem:[#allocation5 + $0x8] sm:$0xff] %vm2190_vm9, %v2322_v33  ;;  %2330 = vperm.xlu1 %2742, %v2322_v33  }
 0x836   :  { %v2351_v51 = vmul.f32 1.442695, %v2348_v9 }
 0x837   :  { %v2373_v52 = vld [vmem:[#allocation3] sm:$0xff] }
 0x838   :  { %v2379_v1 = vld [vmem:[#allocation5] sm:$0xff] }
 0x839   :  { %v2381_v44 = vsub.f32 %v2379_v1, %v2373_v52 }
 0x83b   :  { %v2374_v46 = vld [vmem:[#allocation3 + $0x8] sm:$0xff]  ;;  %v2383_v29 = vmul.f32 1.442695, %v2381_v44 }
 0x83c   :  { %v2380_v37 = vld [vmem:[#allocation5 + $0x8] sm:$0xff] }
 0x83d   :  { %v2382_v23 = vsub.f32 %v2380_v37, %v2374_v46 }
 0x83f   :  { %v2385_v59 = vmul.f32 1.442695, %v2382_v23 }
 0x8ab   :  { %v2326_v7 = vpop.permute.xlu0 %2325 }
 0x8ac   :  { %v2333_v27 = vsub.f32 %v2309_v45, %v2326_v7 }
 0x8ae   :  { %v2335_v55 = vmul.f32 1.442695, %v2333_v27 }
 0x8af   :  { %v2331_v17 = vpop.permute.xlu1 %2330 }
 0x8b0   :  { %2901 = vpow2.f32 %v2335_v55  ;;  %v2334_v38 = vsub.f32 %v2312_v53, %v2331_v17 }
 0x8b2   :  { %v2337_v3 = vmul.f32 1.442695, %v2334_v38 }
 0x8b4   :  { %2903 = vpow2.f32 %v2337_v3 }
 0x8b5   :  { %2905 = vpow2.f32 %v2349_v2 }
 0x8b6   :  { %2907 = vpow2.f32 %v2351_v51 }
 0x8b7   :  { %2909 = vpow2.f32 %v2383_v29 }
 0x8bd   :  { %v2902_v42 = vpop.eup %2901 }
 0x8be   :  { %2355 = vadd.xlane.f32.xlu1 %v2902_v42 }
 0x8c1   :  { %v2904_v56 = vpop.eup %2903 }
 0x8c2   :  { %2357 = vadd.xlane.f32.xlu0 %v2904_v56  ;;  %v2906_v22 = vpop.eup %2905 }
 0x8c3   :  { %v2353_v18 = vmul.f32 %v2906_v22, %v2345_v41  ;;  %v2908_v54 = vpop.eup %2907 }
 0x8c4   :  { %v2354_v11 = vmul.f32 %v2908_v54, %v2346_v15  ;;  %v2910_v25 = vpop.eup %2909 }
 0x947   :  { %v2356_v62 = vpop.xlane.xlu1 %2355 }
 0x948   :  { %v2359_v43 = vadd.f32 %v2356_v62, %v2353_v18 }
 0x94a   :  { %2362 = vst.msk [vmem:[#allocation4] sm:$0xff] %vm2190_vm9, %v2359_v43 }
 0x94b   :  { %v2358_v12 = vpop.xlane.xlu0 %2357 }
 0x94c   :  { %v2360_v48 = vadd.f32 %v2358_v12, %v2354_v11 }
 0x94e   :  { %2363 = vst.msk [vmem:[#allocation4 + $0x8] sm:$0xff] %vm2190_vm9, %v2360_v48 }
 0x951   :  { %v2375_v4 = vld [vmem:[#allocation4] sm:$0xff] }
 0x952   :  { %2911 = vrcp.f32 %v2375_v4 }
 0x953   :  { %2913 = vpow2.f32 %v2385_v59 }
 0x955   :  { %v2376_v58 = vld [vmem:[#allocation4 + $0x8] sm:$0xff] }
 0x956   :  { %2915 = vrcp.f32 %v2376_v58 }
 0x95f   :  { %v2912_v47 = vpop.eup %2911 }
 0x960   :  { %v2387_v57 = vmul.f32 %v2912_v47, %v2910_v25  ;;  %v2914_v34 = vpop.eup %2913 }
 0x962   :  { %2393 = vperm.xlu0 %2741, %v2387_v57  }
 0x963   :  { %v2916_v39 = vpop.eup %2915 }
 0x964   :  { %v2388_v50 = vmul.f32 %v2916_v39, %v2914_v34 }
 0x966   :  { %2398 = vperm.xlu1 %2742, %v2388_v50  }
 0x9dd   :  { %v2394_v26 = vpop.permute.xlu0 %2393 }
 0x9de   :  { %v2401_v32 = vmul.f32 %v2902_v42, %v2394_v26 }
 0x9e0   :  { %2403 = vst [vmem:[%s3785_s14] sm:$0xff] %v2401_v32 }
 0x9e1   :  { %v2399_v40 = vpop.permute.xlu1 %2398 }
 0x9e2   :  { %v2402_v49 = vmul.f32 %v2904_v56, %v2399_v40 }
 0x9e4   :  { %2404 = vst [vmem:[%s3785_s14 + $0x8] sm:$0xff] %v2402_v49 }
 0x9e5   :  { %2413 = vsyncpa [#allocation7], 1 }
 0x9e6   :  { %2414 = vsyncpa [#allocation9], 1 }
 0x9e7   :  { %2415 = vsyncpa [#allocation12], 1 }

</bundles_post_ra>
